<compile_context>
chip_gen: v5e
topology: v5e:2x2
jax: 0.10.0
libtpu: 0.0.40
codegen_flags: <defaults>
</compile_context>

<pallas_src>
import functools

import jax
import jax.numpy as jnp
from jax.experimental import pallas as pl
from jax.experimental.pallas import tpu as pltpu


_BT = 32                        # max images per grid step (keeps VMEM use modest on v7x)
_VMEM_LIMIT = 32 * 1024 * 1024


def _shift(x, di, dj):
    # x: (bt, 8, 8, C).  Returns y with y[:, a, b] = x[:, a+di, b+dj] for a+di<8, b+dj<8.
    # The wrapped row/col 7 is junk: it is masked out of the BN statistics and multiplied by
    # zero Linear weights in the head.
    if di:
        x = jnp.concatenate([x[:, di:, :, :], x[:, :di, :, :]], axis=1)
    if dj:
        x = jnp.concatenate([x[:, :, dj:, :], x[:, :, :dj, :]], axis=2)
    return x


def _disc_kernel(p_ref, w1_ref, b1m_ref, w2_ref, b2_ref,
                 gamma_ref, beta_ref, wl_ref, bl_ref,
                 out_ref,
                 y2_scr, stats_ref,
                 *, bt, b_real, eps):
    ph = pl.program_id(0)        # 0: conv1+conv2+BN stats, 1: BN apply + head
    ti = pl.program_id(1)        # batch tile

    @pl.when(ph == 0)
    def _conv_phase():
        # ---- conv1 directly in space-to-depth layout (block-diagonal weight) ----
        p2d = p_ref[...].reshape(bt * 64, 64)                                   # bf16
        a1 = jnp.dot(p2d, w1_ref[...], preferred_element_type=jnp.float32)      # (bt*64,256)
        a1 = a1.reshape(bt, 8, 8, 256) + b1m_ref[...]        # bias masked at the pad ring
        ys = jnp.where(a1 >= 0.0, a1, 0.2 * a1).astype(jnp.bfloat16)  # LeakyReLU, bf16 taps

        # ---- conv2 as a stride-1 2x2 conv: 4 accumulated bf16 MXU dots ----
        acc = None
        for t, (di, dj) in enumerate(((0, 0), (0, 1), (1, 0), (1, 1))):
            tap = _shift(ys, di, dj).reshape(bt * 64, 256)
            d = jnp.dot(tap, w2_ref[pl.ds(t * 256, 256), :],
                        preferred_element_type=jnp.float32)
            acc = d if acc is None else acc + d
        acc = acc + b2_ref[...]                                                 # (bt*64,128)

        # ---- stash pre-BN activations in VMEM (never written to HBM) ----
        y2_scr[ti] = acc.reshape(bt, 64, 128).astype(jnp.bfloat16)

        # ---- exact BatchNorm partial statistics (mask batch pad + junk row/col 7) ----
        acc4 = acc.reshape(bt, 8, 8, 128)
        limit = b_real - ti * bt
        b_idx = jax.lax.broadcasted_iota(jnp.int32, (bt, 8, 8, 1), 0)
        h_idx = jax.lax.broadcasted_iota(jnp.int32, (bt, 8, 8, 1), 1)
        w_idx = jax.lax.broadcasted_iota(jnp.int32, (bt, 8, 8, 1), 2)
        m = jnp.where((b_idx < limit) & (h_idx < 7) & (w_idx < 7), acc4, 0.0)
        s = jnp.sum(m, axis=(0, 1, 2), keepdims=True).reshape(1, 128)
        sq = jnp.sum(m * m, axis=(0, 1, 2), keepdims=True).reshape(1, 128)
        part = jnp.concatenate([s, sq], axis=0)                                 # (2,128)

        @pl.when(ti == 0)
        def _():
            stats_ref[...] = jnp.zeros_like(stats_ref)
        stats_ref[...] += part

    @pl.when(ph == 1)
    def _head_phase():
        n = jnp.float32(b_real * 49)
        stats = stats_ref[...]                                                  # (2,128)
        mean = stats[0:1, :] / n
        var = jnp.maximum(stats[1:2, :] / n - mean * mean, 0.0)  # biased var (PyTorch train)
        inv = jax.lax.rsqrt(var + eps)
        scale = gamma_ref[...] * inv                                            # (1,128)
        shift = beta_ref[...] - mean * scale

        y = y2_scr[ti].astype(jnp.float32)                                      # (bt,64,128)
        y = y * scale + shift                                                   # BatchNorm
        y = jnp.where(y >= 0.0, y, 0.2 * y)                                     # LeakyReLU
        z = jnp.sum(jnp.sum(y * wl_ref[...], axis=2), axis=1, keepdims=True)    # (bt,1)
        z = z + bl_ref[...]
        e = jnp.exp(-jnp.abs(z))                                                # stable sigmoid
        r = 1.0 / (1.0 + e)
        out_ref[...] = jnp.where(z >= 0.0, r, 1.0 - r)


def _disc_call(P, w1big, b1map, w2f, b2, gamma, beta, wl, bl, *, bt, b_real):
    bp = P.shape[0]
    n_tiles = bp // bt
    kernel = functools.partial(_disc_kernel, bt=bt, b_real=b_real, eps=1e-5)

    def p_map(ph, ti):
        # phase 0: walk the batch tiles; phase 1: stay pinned on the last tile so the
        # pipeline does not re-fetch P while the head runs out of VMEM scratch.
        return (ti * (1 - ph) + (n_tiles - 1) * ph, 0, 0, 0)

    return pl.pallas_call(
        kernel,
        out_shape=jax.ShapeDtypeStruct((bp, 1), jnp.float32),
        grid=(2, n_tiles),
        in_specs=[
            pl.BlockSpec((bt, 8, 8, 64), p_map),                       # conv1 patches
            pl.BlockSpec((64, 256), lambda ph, ti: (0, 0)),            # block-diag conv1 W
            pl.BlockSpec((1, 8, 8, 256), lambda ph, ti: (0, 0, 0, 0)), # masked conv1 bias
            pl.BlockSpec((1024, 128), lambda ph, ti: (0, 0)),          # conv2 W
            pl.BlockSpec((1, 128), lambda ph, ti: (0, 0)),             # conv2 b
            pl.BlockSpec((1, 128), lambda ph, ti: (0, 0)),             # gamma
            pl.BlockSpec((1, 128), lambda ph, ti: (0, 0)),             # beta
            pl.BlockSpec((64, 128), lambda ph, ti: (0, 0)),            # Linear W (spatial,ch)
            pl.BlockSpec((1, 1), lambda ph, ti: (0, 0)),               # Linear b
        ],
        out_specs=pl.BlockSpec((bt, 1), lambda ph, ti: (ph * ti, 0)),
        scratch_shapes=[
            pltpu.VMEM((n_tiles, bt, 64, 128), jnp.bfloat16),          # pre-BN activations
            pltpu.VMEM((2, 128), jnp.float32),                         # BN sum / sum-of-sq
        ],
        compiler_params=pltpu.CompilerParams(
            # stats accumulate in shared scratch across tiles and the phases are ordered,
            # so both axes must stay "arbitrary".
            dimension_semantics=("arbitrary", "arbitrary"),
            vmem_limit_bytes=_VMEM_LIMIT,
        ),
        cost_estimate=pl.CostEstimate(
            flops=2 * bp * 64 * (64 * 256 + 1024 * 128) + 2 * bp * 64 * 128,
            transcendentals=bp,
            bytes_accessed=P.size * 2 + w1big.size * 2 + w2f.size * 2
            + b1map.size * 4 + wl.size * 4 + bp * 4),
    )(P, w1big, b1map, w2f, b2, gamma, beta, wl, bl)


# ------------------------------- glue (JAX) -------------------------------- #

def init_params(key):
    k1, k2, k3 = jax.random.split(key, 3)
    return {
        "w1": 0.05 * jax.random.normal(k1, (64, 1, 4, 4), jnp.float32),     # Conv2d(1,64,4)
        "b1": jnp.zeros((64,), jnp.float32),
        "w2": 0.05 * jax.random.normal(k2, (128, 64, 4, 4), jnp.float32),   # Conv2d(64,128,4)
        "b2": jnp.zeros((128,), jnp.float32),
        "gamma": jnp.ones((128,), jnp.float32),                             # BatchNorm2d(128)
        "beta": jnp.zeros((128,), jnp.float32),
        "wl": 0.05 * jax.random.normal(k3, (1, 128 * 7 * 7), jnp.float32),  # Linear(6272,1)
        "bl": jnp.zeros((1,), jnp.float32),
    }


def discriminator_forward(img_nchw, params):
    assert img_nchw.shape[1:] == (1, 28, 28)
    B = img_nchw.shape[0]
    bt = B if B <= _BT else _BT            # bt is a multiple of 8 whenever n_tiles > 1
    bp = ((B + bt - 1) // bt) * bt

    x = img_nchw.reshape(B, 28, 28).astype(jnp.float32)
    if bp != B:
        x = jnp.pad(x, ((0, bp - B), (0, 0), (0, 0)))      # batch pad (masked in stats)
    xpad = jnp.pad(x, ((0, 0), (1, 1), (1, 1)))            # conv1 padding=1 -> (bp,30,30)

    # conv1 patches at every conv1 output position (14x14), column order k = kh*4 + kw,
    # then pad the conv1 OUTPUT grid by 1 (conv2's padding) and space-to-depth onto the
    # 8x8 block grid: P[b, i, j, sub*16 + k], sub = 2*sub_h + sub_w.
    taps = [xpad[:, kh:kh + 28:2, kw:kw + 28:2] for kh in range(4) for kw in range(4)]
    pat = jnp.stack(taps, axis=-1)                                         # (bp,14,14,16)
    patp = jnp.pad(pat, ((0, 0), (1, 1), (1, 1), (0, 0)))                  # (bp,16,16,16)
    P = patp.reshape(bp, 8, 2, 8, 2, 16).transpose(0, 1, 3, 2, 4, 5)
    P = P.reshape(bp, 8, 8, 64).astype(jnp.bfloat16)

    # conv1 weight -> block-diagonal (64,256) so its matmul output lands directly in the
    # space-to-depth channel layout sub*64 + c.
    w1col = params["w1"].reshape(64, 16).T                                  # (16,64)
    w1big = jnp.kron(jnp.eye(4, dtype=w1col.dtype), w1col).astype(jnp.bfloat16)

    # conv1 bias, zeroed at positions that fall on conv2's zero-padding ring (so those
    # positions stay exactly zero: their patch rows in P are zero by construction).
    idx8 = jnp.arange(8)
    sub2 = jnp.arange(2)
    ok = ~(((idx8[:, None] == 0) & (sub2[None, :] == 0)) |
           ((idx8[:, None] == 7) & (sub2[None, :] == 1)))                   # (8,2)
    valid = ok[:, None, :, None] & ok[None, :, None, :]                     # (i,j,sub_h,sub_w)
    b1map = jnp.where(valid[..., None], params["b1"][None, None, None, None, :], 0.0)
    b1map = b1map.reshape(1, 8, 8, 256).astype(jnp.float32)

    # conv2 weight (cout,cin,kh,kw) -> (1024,128), rows = (tap=(kh//2,kw//2), kh%2, kw%2, cin);
    # must stay in lockstep with the kernel's tap order (di outer, dj inner).
    w2 = jnp.transpose(params["w2"], (2, 3, 1, 0)).reshape(2, 2, 2, 2, 64, 128)
    w2f = jnp.transpose(w2, (0, 2, 1, 3, 4, 5)).reshape(1024, 128).astype(jnp.bfloat16)
    b2 = params["b2"].reshape(1, 128)

    gamma = params["gamma"].reshape(1, 128)
    beta = params["beta"].reshape(1, 128)

    # Linear weight -> (spatial, channel) layout on the 8x8 grid, zeros at junk row/col 7.
    wl = params["wl"].reshape(128, 49).T.reshape(7, 7, 128)
    wl = jnp.pad(wl, ((0, 1), (0, 1), (0, 0))).reshape(64, 128)
    bl = params["bl"].reshape(1, 1)

    out = _disc_call(P, w1big, b1map, w2f, b2, gamma, beta, wl, bl, bt=bt, b_real=B)
    return out[:B]


# Pure-JAX reference (precision-matched: bf16 conv operands, f32 accum, bf16 y2 stash).
def _reference_forward(img, params):
    x = img.astype(jnp.bfloat16)
    w1 = params["w1"].astype(jnp.bfloat16)
    y1 = jax.lax.conv_general_dilated(
        x, w1, (2, 2), ((1, 1), (1, 1)),
        dimension_numbers=("NCHW", "OIHW", "NCHW"),
        preferred_element_type=jnp.float32)
    y1 = y1 + params["b1"][None, :, None, None]
    y1 = jnp.where(y1 >= 0, y1, 0.2 * y1).astype(jnp.bfloat16)
    w2 = params["w2"].astype(jnp.bfloat16)
    y2 = jax.lax.conv_general_dilated(
        y1, w2, (2, 2), ((1, 1), (1, 1)),
        dimension_numbers=("NCHW", "OIHW", "NCHW"),
        preferred_element_type=jnp.float32)
    y2 = y2 + params["b2"][None, :, None, None]
    mean = jnp.mean(y2, axis=(0, 2, 3), keepdims=True)
    var = jnp.mean(jnp.square(y2 - mean), axis=(0, 2, 3), keepdims=True)
    y2q = y2.astype(jnp.bfloat16).astype(jnp.float32)
    yn = (y2q - mean) * jax.lax.rsqrt(var + 1e-5)
    yn = yn * params["gamma"][None, :, None, None] + params["beta"][None, :, None, None]
    yn = jnp.where(yn >= 0, yn, 0.2 * yn)
    z = yn.reshape(yn.shape[0], -1) @ params["wl"].T + params["bl"]
    return jax.nn.sigmoid(z)


if __name__ == "__main__":
    key = jax.random.PRNGKey(0)
    pkey, xkey = jax.random.split(key)
    params = init_params(pkey)
    # MNIST-sized input required by Linear(128*7*7, 1): (B, 1, 28, 28)
    img = jax.random.normal(xkey, (2, 1, 28, 28), jnp.float32)
    fwd = jax.jit(discriminator_forward)
    validity = fwd(img, params)
    jax.block_until_ready(validity)
    assert validity.shape == (2, 1)
    assert bool(jnp.all((validity >= 0.0) & (validity <= 1.0)))
    ref = _reference_forward(img, params)
    err = float(jnp.max(jnp.abs(validity - ref)))
    assert err < 1e-2, f"mismatch vs reference: {err}"
    print("KERNEL_OK")
</pallas_src>

<mosaic_0001>
module attributes {stable_mosaic.version = 11 : i64} {
  func.func @_disc_kernel(%arg0: i32, %arg1: i32, %arg2: memref<2x8x8x64xbf16, #tpu.memory_space<vmem>>, %arg3: memref<64x256xbf16, #tpu.memory_space<vmem>>, %arg4: memref<1x8x8x256xf32, #tpu.memory_space<vmem>>, %arg5: memref<1024x128xbf16, #tpu.memory_space<vmem>>, %arg6: memref<1x128xf32, #tpu.memory_space<vmem>>, %arg7: memref<1x128xf32, #tpu.memory_space<vmem>>, %arg8: memref<1x128xf32, #tpu.memory_space<vmem>>, %arg9: memref<64x128xf32, #tpu.memory_space<vmem>>, %arg10: memref<1x1xf32, #tpu.memory_space<vmem>>, %arg11: memref<2x1xf32, #tpu.memory_space<vmem>>, %arg12: memref<1x2x64x128xbf16, #tpu.memory_space<vmem>>, %arg13: memref<2x128xf32, #tpu.memory_space<vmem>>) attributes {dimension_semantics = [#tpu.dimension_semantics<arbitrary>, #tpu.dimension_semantics<arbitrary>], iteration_bounds = array<i64: 2, 1>, scalar_prefetch = 0 : i64, scratch_operands = 2 : i64, tpu.core_type = #tpu.core_type<tc>, window_params = [{transform_indices = @transform_0, window_bounds = array<i64: 2, 8, 8, 64>}, {pipeline_mode = #tpu.pipeline_mode<synchronous>, transform_indices = @transform_1, window_bounds = array<i64: 64, 256>}, {pipeline_mode = #tpu.pipeline_mode<synchronous>, transform_indices = @transform_2, window_bounds = array<i64: 1, 8, 8, 256>}, {pipeline_mode = #tpu.pipeline_mode<synchronous>, transform_indices = @transform_3, window_bounds = array<i64: 1024, 128>}, {pipeline_mode = #tpu.pipeline_mode<synchronous>, transform_indices = @transform_4, window_bounds = array<i64: 1, 128>}, {pipeline_mode = #tpu.pipeline_mode<synchronous>, transform_indices = @transform_5, window_bounds = array<i64: 1, 128>}, {pipeline_mode = #tpu.pipeline_mode<synchronous>, transform_indices = @transform_6, window_bounds = array<i64: 1, 128>}, {pipeline_mode = #tpu.pipeline_mode<synchronous>, transform_indices = @transform_7, window_bounds = array<i64: 64, 128>}, {pipeline_mode = #tpu.pipeline_mode<synchronous>, transform_indices = @transform_8, window_bounds = array<i64: 1, 1>}, {transform_indices = @transform_9, window_bounds = array<i64: 2, 1>}]} {
    %c0_i32 = arith.constant 0 : i32
    %0 = arith.cmpi eq, %arg0, %c0_i32 : i32
    %1 = arith.extui %0 : i1 to i32
    %c0_i32_0 = arith.constant 0 : i32
    %2 = arith.cmpi ne, %1, %c0_i32_0 : i32
    scf.if %2 {
      %c0 = arith.constant 0 : index
      %c0_2 = arith.constant 0 : index
      %c0_3 = arith.constant 0 : index
      %c0_4 = arith.constant 0 : index
      %6 = vector.load %arg2[%c0, %c0_2, %c0_3, %c0_4] : memref<2x8x8x64xbf16, #tpu.memory_space<vmem>>, vector<2x8x8x64xbf16>
      %7 = vector.shape_cast %6 : vector<2x8x8x64xbf16> to vector<128x64xbf16>
      %c0_5 = arith.constant 0 : index
      %c0_6 = arith.constant 0 : index
      %8 = vector.load %arg3[%c0_5, %c0_6] : memref<64x256xbf16, #tpu.memory_space<vmem>>, vector<64x256xbf16>
      %cst = arith.constant dense<0.000000e+00> : vector<128x256xf32>
      %9 = tpu.matmul %7, %8, %cst {dimension_numbers = #tpu.dot_dimension_numbers<[1], [0], [0], [1], [0, 0, 1, 1], [], []>} : vector<128x64xbf16>, vector<64x256xbf16>, vector<128x256xf32> -> vector<128x256xf32>
      %10 = vector.shape_cast %9 : vector<128x256xf32> to vector<2x8x8x256xf32>
      %c0_7 = arith.constant 0 : index
      %c0_8 = arith.constant 0 : index
      %c0_9 = arith.constant 0 : index
      %c0_10 = arith.constant 0 : index
      %11 = vector.load %arg4[%c0_7, %c0_8, %c0_9, %c0_10] : memref<1x8x8x256xf32, #tpu.memory_space<vmem>>, vector<1x8x8x256xf32>
      %12 = vector.broadcast %11 : vector<1x8x8x256xf32> to vector<2x8x8x256xf32>
      %13 = arith.addf %10, %12 : vector<2x8x8x256xf32>
      %cst_11 = arith.constant 0.000000e+00 : f32
      %14 = vector.broadcast %cst_11 : f32 to vector<2x8x8x256xf32>
      %15 = arith.cmpf oge, %13, %14 : vector<2x8x8x256xf32>
      %cst_12 = arith.constant 2.000000e-01 : f32
      %16 = vector.broadcast %cst_12 : f32 to vector<2x8x8x256xf32>
      %17 = arith.mulf %16, %13 : vector<2x8x8x256xf32>
      %18 = arith.select %15, %13, %17 : vector<2x8x8x256xi1>, vector<2x8x8x256xf32>
      %19 = arith.truncf %18 : vector<2x8x8x256xf32> to vector<2x8x8x256xbf16>
      %20 = vector.shape_cast %19 : vector<2x8x8x256xbf16> to vector<128x256xbf16>
      %c0_13 = arith.constant 0 : index
      %c0_14 = arith.constant 0 : index
      %21 = vector.load %arg5[%c0_13, %c0_14] : memref<1024x128xbf16, #tpu.memory_space<vmem>>, vector<256x128xbf16>
      %cst_15 = arith.constant dense<0.000000e+00> : vector<128x128xf32>
      %22 = tpu.matmul %20, %21, %cst_15 {dimension_numbers = #tpu.dot_dimension_numbers<[1], [0], [0], [1], [0, 0, 1, 1], [], []>} : vector<128x256xbf16>, vector<256x128xbf16>, vector<128x128xf32> -> vector<128x128xf32>
      %23 = vector.extract_strided_slice %19 {offsets = [0, 0, 1, 0], sizes = [2, 8, 7, 256], strides = [1, 1, 1, 1]} : vector<2x8x8x256xbf16> to vector<2x8x7x256xbf16>
      %24 = vector.extract_strided_slice %19 {offsets = [0, 0, 0, 0], sizes = [2, 8, 1, 256], strides = [1, 1, 1, 1]} : vector<2x8x8x256xbf16> to vector<2x8x1x256xbf16>
      %25 = tpu.concatenate %23, %24 in 2 : vector<2x8x7x256xbf16>, vector<2x8x1x256xbf16> -> vector<2x8x8x256xbf16>
      %26 = vector.shape_cast %25 : vector<2x8x8x256xbf16> to vector<128x256xbf16>
      %c256 = arith.constant 256 : index
      %c0_16 = arith.constant 0 : index
      %27 = vector.load %arg5[%c256, %c0_16] : memref<1024x128xbf16, #tpu.memory_space<vmem>>, vector<256x128xbf16>
      %cst_17 = arith.constant dense<0.000000e+00> : vector<128x128xf32>
      %28 = tpu.matmul %26, %27, %cst_17 {dimension_numbers = #tpu.dot_dimension_numbers<[1], [0], [0], [1], [0, 0, 1, 1], [], []>} : vector<128x256xbf16>, vector<256x128xbf16>, vector<128x128xf32> -> vector<128x128xf32>
      %29 = arith.addf %22, %28 : vector<128x128xf32>
      %30 = vector.extract_strided_slice %19 {offsets = [0, 1, 0, 0], sizes = [2, 7, 8, 256], strides = [1, 1, 1, 1]} : vector<2x8x8x256xbf16> to vector<2x7x8x256xbf16>
      %31 = vector.extract_strided_slice %19 {offsets = [0, 0, 0, 0], sizes = [2, 1, 8, 256], strides = [1, 1, 1, 1]} : vector<2x8x8x256xbf16> to vector<2x1x8x256xbf16>
      %32 = tpu.concatenate %30, %31 in 1 : vector<2x7x8x256xbf16>, vector<2x1x8x256xbf16> -> vector<2x8x8x256xbf16>
      %33 = vector.shape_cast %32 : vector<2x8x8x256xbf16> to vector<128x256xbf16>
      %c512 = arith.constant 512 : index
      %c0_18 = arith.constant 0 : index
      %34 = vector.load %arg5[%c512, %c0_18] : memref<1024x128xbf16, #tpu.memory_space<vmem>>, vector<256x128xbf16>
      %cst_19 = arith.constant dense<0.000000e+00> : vector<128x128xf32>
      %35 = tpu.matmul %33, %34, %cst_19 {dimension_numbers = #tpu.dot_dimension_numbers<[1], [0], [0], [1], [0, 0, 1, 1], [], []>} : vector<128x256xbf16>, vector<256x128xbf16>, vector<128x128xf32> -> vector<128x128xf32>
      %36 = arith.addf %29, %35 : vector<128x128xf32>
      %37 = vector.extract_strided_slice %19 {offsets = [0, 1, 0, 0], sizes = [2, 7, 8, 256], strides = [1, 1, 1, 1]} : vector<2x8x8x256xbf16> to vector<2x7x8x256xbf16>
      %38 = vector.extract_strided_slice %19 {offsets = [0, 0, 0, 0], sizes = [2, 1, 8, 256], strides = [1, 1, 1, 1]} : vector<2x8x8x256xbf16> to vector<2x1x8x256xbf16>
      %39 = tpu.concatenate %37, %38 in 1 : vector<2x7x8x256xbf16>, vector<2x1x8x256xbf16> -> vector<2x8x8x256xbf16>
      %40 = vector.extract_strided_slice %39 {offsets = [0, 0, 1, 0], sizes = [2, 8, 7, 256], strides = [1, 1, 1, 1]} : vector<2x8x8x256xbf16> to vector<2x8x7x256xbf16>
      %41 = vector.extract_strided_slice %39 {offsets = [0, 0, 0, 0], sizes = [2, 8, 1, 256], strides = [1, 1, 1, 1]} : vector<2x8x8x256xbf16> to vector<2x8x1x256xbf16>
      %42 = tpu.concatenate %40, %41 in 2 : vector<2x8x7x256xbf16>, vector<2x8x1x256xbf16> -> vector<2x8x8x256xbf16>
      %43 = vector.shape_cast %42 : vector<2x8x8x256xbf16> to vector<128x256xbf16>
      %c768 = arith.constant 768 : index
      %c0_20 = arith.constant 0 : index
      %44 = vector.load %arg5[%c768, %c0_20] : memref<1024x128xbf16, #tpu.memory_space<vmem>>, vector<256x128xbf16>
      %cst_21 = arith.constant dense<0.000000e+00> : vector<128x128xf32>
      %45 = tpu.matmul %43, %44, %cst_21 {dimension_numbers = #tpu.dot_dimension_numbers<[1], [0], [0], [1], [0, 0, 1, 1], [], []>} : vector<128x256xbf16>, vector<256x128xbf16>, vector<128x128xf32> -> vector<128x128xf32>
      %46 = arith.addf %36, %45 : vector<128x128xf32>
      %c0_22 = arith.constant 0 : index
      %c0_23 = arith.constant 0 : index
      %47 = vector.load %arg6[%c0_22, %c0_23] : memref<1x128xf32, #tpu.memory_space<vmem>>, vector<1x128xf32>
      %48 = vector.broadcast %47 : vector<1x128xf32> to vector<128x128xf32>
      %49 = arith.addf %46, %48 : vector<128x128xf32>
      %50 = vector.shape_cast %49 : vector<128x128xf32> to vector<2x64x128xf32>
      %51 = arith.truncf %50 : vector<2x64x128xf32> to vector<2x64x128xbf16>
      %52 = arith.index_cast %arg1 : i32 to index
      %c0_24 = arith.constant 0 : index
      %c0_25 = arith.constant 0 : index
      %c0_26 = arith.constant 0 : index
      %53 = vector.load %arg12[%52, %c0_24, %c0_25, %c0_26] : memref<1x2x64x128xbf16, #tpu.memory_space<vmem>>, vector<1x2x64x128xbf16>
      %54 = vector.shape_cast %53 : vector<1x2x64x128xbf16> to vector<2x64x128xbf16>
      %55 = vector.shape_cast %51 : vector<2x64x128xbf16> to vector<1x2x64x128xbf16>
      tpu.vector_store %arg12[%52, %c0_24, %c0_25, %c0_26], %55 {strides = array<i32>} : memref<1x2x64x128xbf16, #tpu.memory_space<vmem>>, vector<1x2x64x128xbf16>,
      %56 = vector.shape_cast %49 : vector<128x128xf32> to vector<2x8x8x128xf32>
      %c2_i32 = arith.constant 2 : i32
      %57 = arith.muli %arg1, %c2_i32 : i32
      %c2_i32_27 = arith.constant 2 : i32
      %58 = arith.subi %c2_i32_27, %57 : i32
      %59 = tpu.iota {dimensions = array<i32: 0>} : vector<2x8x8x1xi32>
      %60 = tpu.iota {dimensions = array<i32: 1>} : vector<2x8x8x1xi32>
      %61 = tpu.iota {dimensions = array<i32: 2>} : vector<2x8x8x1xi32>
      %62 = vector.broadcast %58 : i32 to vector<2x8x8x1xi32>
      %63 = arith.cmpi slt, %59, %62 : vector<2x8x8x1xi32>
      %c7_i32 = arith.constant 7 : i32
      %64 = vector.broadcast %c7_i32 : i32 to vector<2x8x8x1xi32>
      %65 = arith.cmpi slt, %60, %64 : vector<2x8x8x1xi32>
      %66 = arith.andi %63, %65 : vector<2x8x8x1xi1>
      %c7_i32_28 = arith.constant 7 : i32
      %67 = vector.broadcast %c7_i32_28 : i32 to vector<2x8x8x1xi32>
      %68 = arith.cmpi slt, %61, %67 : vector<2x8x8x1xi32>
      %69 = arith.andi %66, %68 : vector<2x8x8x1xi1>
      %cst_29 = arith.constant 0.000000e+00 : f32
      %70 = vector.shape_cast %69 : vector<2x8x8x1xi1> to vector<2x8x8x1xi1>
      %71 = vector.broadcast %70 : vector<2x8x8x1xi1> to vector<2x8x8x128xi1>
      %72 = vector.broadcast %cst_29 : f32 to vector<2x8x8x128xf32>
      %73 = arith.select %71, %56, %72 : vector<2x8x8x128xi1>, vector<2x8x8x128xf32>
      %cst_30 = arith.constant dense<0.000000e+00> : vector<128xf32>
      %74 = vector.multi_reduction <add>, %73, %cst_30 [0, 1, 2] : vector<2x8x8x128xf32> to vector<128xf32>
      %75 = vector.shape_cast %74 : vector<128xf32> to vector<1x1x1x128xf32>
      %76 = vector.shape_cast %75 : vector<1x1x1x128xf32> to vector<1x128xf32>
      %77 = arith.mulf %73, %73 : vector<2x8x8x128xf32>
      %cst_31 = arith.constant dense<0.000000e+00> : vector<128xf32>
      %78 = vector.multi_reduction <add>, %77, %cst_31 [0, 1, 2] : vector<2x8x8x128xf32> to vector<128xf32>
      %79 = vector.shape_cast %78 : vector<128xf32> to vector<1x1x1x128xf32>
      %80 = vector.shape_cast %79 : vector<1x1x1x128xf32> to vector<1x128xf32>
      %81 = tpu.concatenate %76, %80 in 0 : vector<1x128xf32>, vector<1x128xf32> -> vector<2x128xf32>
      %c0_i32_32 = arith.constant 0 : i32
      %82 = arith.cmpi eq, %arg1, %c0_i32_32 : i32
      %83 = arith.extui %82 : i1 to i32
      %c0_i32_33 = arith.constant 0 : i32
      %84 = arith.cmpi ne, %83, %c0_i32_33 : i32
      scf.if %84 {
        %cst_38 = arith.constant 0.000000e+00 : f32
        %88 = vector.broadcast %cst_38 : f32 to vector<2x128xf32>
        %c0_39 = arith.constant 0 : index
        %c0_40 = arith.constant 0 : index
        %89 = vector.load %arg13[%c0_39, %c0_40] : memref<2x128xf32, #tpu.memory_space<vmem>>, vector<2x128xf32>
        tpu.vector_store %arg13[%c0_39, %c0_40], %88 {strides = array<i32>} : memref<2x128xf32, #tpu.memory_space<vmem>>, vector<2x128xf32>,
      } else {
      }
      %c0_34 = arith.constant 0 : index
      %c0_35 = arith.constant 0 : index
      %85 = vector.load %arg13[%c0_34, %c0_35] : memref<2x128xf32, #tpu.memory_space<vmem>>, vector<2x128xf32>
      %86 = arith.addf %85, %81 : vector<2x128xf32>
      %c0_36 = arith.constant 0 : index
      %c0_37 = arith.constant 0 : index
      %87 = vector.load %arg13[%c0_36, %c0_37] : memref<2x128xf32, #tpu.memory_space<vmem>>, vector<2x128xf32>
      tpu.vector_store %arg13[%c0_36, %c0_37], %86 {strides = array<i32>} : memref<2x128xf32, #tpu.memory_space<vmem>>, vector<2x128xf32>,
    } else {
    }
    %c1_i32 = arith.constant 1 : i32
    %3 = arith.cmpi eq, %arg0, %c1_i32 : i32
    %4 = arith.extui %3 : i1 to i32
    %c0_i32_1 = arith.constant 0 : i32
    %5 = arith.cmpi ne, %4, %c0_i32_1 : i32
    scf.if %5 {
      %c0 = arith.constant 0 : index
      %c0_2 = arith.constant 0 : index
      %6 = vector.load %arg13[%c0, %c0_2] : memref<2x128xf32, #tpu.memory_space<vmem>>, vector<2x128xf32>
      %7 = vector.extract_strided_slice %6 {offsets = [0, 0], sizes = [1, 128], strides = [1, 1]} : vector<2x128xf32> to vector<1x128xf32>
      %cst = arith.constant 9.800000e+01 : f32
      %8 = vector.broadcast %cst : f32 to vector<1x128xf32>
      %9 = arith.divf %7, %8 : vector<1x128xf32>
      %10 = vector.extract_strided_slice %6 {offsets = [1, 0], sizes = [1, 128], strides = [1, 1]} : vector<2x128xf32> to vector<1x128xf32>
      %cst_3 = arith.constant 9.800000e+01 : f32
      %11 = vector.broadcast %cst_3 : f32 to vector<1x128xf32>
      %12 = arith.divf %10, %11 : vector<1x128xf32>
      %13 = arith.mulf %9, %9 : vector<1x128xf32>
      %14 = arith.subf %12, %13 : vector<1x128xf32>
      %cst_4 = arith.constant 0.000000e+00 : f32
      %15 = vector.broadcast %cst_4 : f32 to vector<1x128xf32>
      %16 = arith.maximumf %14, %15 : vector<1x128xf32>
      %cst_5 = arith.constant 9.99999974E-6 : f32
      %17 = vector.broadcast %cst_5 : f32 to vector<1x128xf32>
      %18 = arith.addf %16, %17 : vector<1x128xf32>
      %19 = math.rsqrt %18 : vector<1x128xf32>
      %c0_6 = arith.constant 0 : index
      %c0_7 = arith.constant 0 : index
      %20 = vector.load %arg7[%c0_6, %c0_7] : memref<1x128xf32, #tpu.memory_space<vmem>>, vector<1x128xf32>
      %21 = arith.mulf %20, %19 : vector<1x128xf32>
      %c0_8 = arith.constant 0 : index
      %c0_9 = arith.constant 0 : index
      %22 = vector.load %arg8[%c0_8, %c0_9] : memref<1x128xf32, #tpu.memory_space<vmem>>, vector<1x128xf32>
      %23 = arith.mulf %9, %21 : vector<1x128xf32>
      %24 = arith.subf %22, %23 : vector<1x128xf32>
      %25 = arith.index_cast %arg1 : i32 to index
      %c0_10 = arith.constant 0 : index
      %c0_11 = arith.constant 0 : index
      %c0_12 = arith.constant 0 : index
      %26 = vector.load %arg12[%25, %c0_10, %c0_11, %c0_12] : memref<1x2x64x128xbf16, #tpu.memory_space<vmem>>, vector<1x2x64x128xbf16>
      %27 = vector.shape_cast %26 : vector<1x2x64x128xbf16> to vector<2x64x128xbf16>
      %28 = arith.extf %27 : vector<2x64x128xbf16> to vector<2x64x128xf32>
      %29 = vector.shape_cast %21 : vector<1x128xf32> to vector<1x1x128xf32>
      %30 = vector.broadcast %29 : vector<1x1x128xf32> to vector<2x64x128xf32>
      %31 = arith.mulf %28, %30 : vector<2x64x128xf32>
      %32 = vector.shape_cast %24 : vector<1x128xf32> to vector<1x1x128xf32>
      %33 = vector.broadcast %32 : vector<1x1x128xf32> to vector<2x64x128xf32>
      %34 = arith.addf %31, %33 : vector<2x64x128xf32>
      %cst_13 = arith.constant 0.000000e+00 : f32
      %35 = vector.broadcast %cst_13 : f32 to vector<2x64x128xf32>
      %36 = arith.cmpf oge, %34, %35 : vector<2x64x128xf32>
      %cst_14 = arith.constant 2.000000e-01 : f32
      %37 = vector.broadcast %cst_14 : f32 to vector<2x64x128xf32>
      %38 = arith.mulf %37, %34 : vector<2x64x128xf32>
      %39 = arith.select %36, %34, %38 : vector<2x64x128xi1>, vector<2x64x128xf32>
      %c0_15 = arith.constant 0 : index
      %c0_16 = arith.constant 0 : index
      %40 = vector.load %arg9[%c0_15, %c0_16] : memref<64x128xf32, #tpu.memory_space<vmem>>, vector<64x128xf32>
      %41 = vector.shape_cast %40 : vector<64x128xf32> to vector<1x64x128xf32>
      %42 = vector.broadcast %41 : vector<1x64x128xf32> to vector<2x64x128xf32>
      %43 = arith.mulf %39, %42 : vector<2x64x128xf32>
      %cst_17 = arith.constant dense<0.000000e+00> : vector<2x64xf32>
      %44 = vector.multi_reduction <add>, %43, %cst_17 [2] : vector<2x64x128xf32> to vector<2x64xf32>
      %cst_18 = arith.constant dense<0.000000e+00> : vector<2xf32>
      %45 = vector.multi_reduction <add>, %44, %cst_18 [1] : vector<2x64xf32> to vector<2xf32>
      %46 = vector.shape_cast %45 : vector<2xf32> to vector<2x1xf32>
      %c0_19 = arith.constant 0 : index
      %c0_20 = arith.constant 0 : index
      %47 = vector.load %arg10[%c0_19, %c0_20] : memref<1x1xf32, #tpu.memory_space<vmem>>, vector<1x1xf32>
      %48 = vector.broadcast %47 : vector<1x1xf32> to vector<2x1xf32>
      %49 = arith.addf %46, %48 : vector<2x1xf32>
      %50 = math.absf %49 : vector<2x1xf32>
      %cst_21 = arith.constant 0.000000e+00 : f32
      %51 = vector.broadcast %cst_21 : f32 to vector<2x1xf32>
      %52 = arith.subf %51, %50 : vector<2x1xf32>
      %53 = math.exp %52 : vector<2x1xf32>
      %cst_22 = arith.constant 1.000000e+00 : f32
      %54 = vector.broadcast %cst_22 : f32 to vector<2x1xf32>
      %55 = arith.addf %54, %53 : vector<2x1xf32>
      %cst_23 = arith.constant 1.000000e+00 : f32
      %56 = vector.broadcast %cst_23 : f32 to vector<2x1xf32>
      %57 = arith.divf %56, %55 : vector<2x1xf32>
      %cst_24 = arith.constant 0.000000e+00 : f32
      %58 = vector.broadcast %cst_24 : f32 to vector<2x1xf32>
      %59 = arith.cmpf oge, %49, %58 : vector<2x1xf32>
      %cst_25 = arith.constant 1.000000e+00 : f32
      %60 = vector.broadcast %cst_25 : f32 to vector<2x1xf32>
      %61 = arith.subf %60, %57 : vector<2x1xf32>
      %62 = arith.select %59, %57, %61 : vector<2x1xi1>, vector<2x1xf32>
      %c0_26 = arith.constant 0 : index
      %c0_27 = arith.constant 0 : index
      %63 = vector.load %arg11[%c0_26, %c0_27] : memref<2x1xf32, #tpu.memory_space<vmem>>, vector<2x1xf32>
      tpu.vector_store %arg11[%c0_26, %c0_27], %62 {strides = array<i32>} : memref<2x1xf32, #tpu.memory_space<vmem>>, vector<2x1xf32>,
    } else {
    }
    return
  }
  func.func @transform_0(%arg0: i32, %arg1: i32) -> (i32, i32, i32, i32) {
    %c1_i32 = arith.constant 1 : i32
    %0 = arith.subi %c1_i32, %arg0 : i32
    %1 = arith.muli %arg1, %0 : i32
    %c0_i32 = arith.constant 0 : i32
    %2 = arith.muli %c0_i32, %arg0 : i32
    %3 = arith.addi %1, %2 : i32
    %c0_i32_0 = arith.constant 0 : i32
    %c0_i32_1 = arith.constant 0 : i32
    %c0_i32_2 = arith.constant 0 : i32
    %c0_i32_3 = arith.constant 0 : i32
    return %3, %c0_i32_0, %c0_i32_1, %c0_i32_2 : i32, i32, i32, i32
  }
  func.func @transform_1(%arg0: i32, %arg1: i32) -> (i32, i32) {
    %c0_i32 = arith.constant 0 : i32
    %c0_i32_0 = arith.constant 0 : i32
    %c0_i32_1 = arith.constant 0 : i32
    return %c0_i32, %c0_i32_0 : i32, i32
  }
  func.func @transform_2(%arg0: i32, %arg1: i32) -> (i32, i32, i32, i32) {
    %c0_i32 = arith.constant 0 : i32
    %c0_i32_0 = arith.constant 0 : i32
    %c0_i32_1 = arith.constant 0 : i32
    %c0_i32_2 = arith.constant 0 : i32
    %c0_i32_3 = arith.constant 0 : i32
    return %c0_i32, %c0_i32_0, %c0_i32_1, %c0_i32_2 : i32, i32, i32, i32
  }
  func.func @transform_3(%arg0: i32, %arg1: i32) -> (i32, i32) {
    %c0_i32 = arith.constant 0 : i32
    %c0_i32_0 = arith.constant 0 : i32
    %c0_i32_1 = arith.constant 0 : i32
    return %c0_i32, %c0_i32_0 : i32, i32
  }
  func.func @transform_4(%arg0: i32, %arg1: i32) -> (i32, i32) {
    %c0_i32 = arith.constant 0 : i32
    %c0_i32_0 = arith.constant 0 : i32
    %c0_i32_1 = arith.constant 0 : i32
    return %c0_i32, %c0_i32_0 : i32, i32
  }
  func.func @transform_5(%arg0: i32, %arg1: i32) -> (i32, i32) {
    %c0_i32 = arith.constant 0 : i32
    %c0_i32_0 = arith.constant 0 : i32
    %c0_i32_1 = arith.constant 0 : i32
    return %c0_i32, %c0_i32_0 : i32, i32
  }
  func.func @transform_6(%arg0: i32, %arg1: i32) -> (i32, i32) {
    %c0_i32 = arith.constant 0 : i32
    %c0_i32_0 = arith.constant 0 : i32
    %c0_i32_1 = arith.constant 0 : i32
    return %c0_i32, %c0_i32_0 : i32, i32
  }
  func.func @transform_7(%arg0: i32, %arg1: i32) -> (i32, i32) {
    %c0_i32 = arith.constant 0 : i32
    %c0_i32_0 = arith.constant 0 : i32
    %c0_i32_1 = arith.constant 0 : i32
    return %c0_i32, %c0_i32_0 : i32, i32
  }
  func.func @transform_8(%arg0: i32, %arg1: i32) -> (i32, i32) {
    %c0_i32 = arith.constant 0 : i32
    %c0_i32_0 = arith.constant 0 : i32
    %c0_i32_1 = arith.constant 0 : i32
    return %c0_i32, %c0_i32_0 : i32, i32
  }
  func.func @transform_9(%arg0: i32, %arg1: i32) -> (i32, i32) {
    %0 = arith.muli %arg0, %arg1 : i32
    %c0_i32 = arith.constant 0 : i32
    %c0_i32_0 = arith.constant 0 : i32
    return %0, %c0_i32 : i32, i32
  }
}

</mosaic_0001>

<bundles_post_ra>
// kernel: discriminator_forward.1
= control target key start
LH: loop header
LB: loop body
LE: loop exit
PB: predicated region body
PF: predicated region fallthrough
CT: control target
= control target key end

     0   :  { %s3510_s11 = smov 0   ;;  %s3512_s12 = smov 0   ;;  %s4658_s0 = inlined_call_operand.vmem [shape: bf16[2,8,8,64], index: 0, kind: input, shape index: {}]   ;;  %s4659_s1 = inlined_call_operand.vmem [shape: bf16[64,256], index: 1, kind: input, shape index: {}]   ;;  %s4660_s2 = inlined_call_operand.vmem [shape: f32[1,8,8,256], index: 2, kind: input, shape index: {}]   ;;  %s4661_s3 = inlined_call_operand.vmem [shape: bf16[1024,128], index: 3, kind: input, shape index: {}]   ;;  %s4662_s4 = inlined_call_operand.vmem [shape: f32[1,128], index: 4, kind: input, shape index: {}]   ;;  %s4663_s5 = inlined_call_operand.vmem [shape: f32[1,128], index: 5, kind: input, shape index: {}]   ;;  %s4664_s6 = inlined_call_operand.vmem [shape: f32[1,128], index: 6, kind: input, shape index: {}]   ;;  %s4665_s7 = inlined_call_operand.vmem [shape: f32[64,128], index: 7, kind: input, shape index: {}]   ;;  %s4666_s8 = inlined_call_operand.<no memory space> [shape: f32[1,1], index: 8, kind: input, shape index: {}]   ;;  %s4667_s9 = inlined_call_operand.vmem [shape: f32[2,1], index: 9, kind: output, shape index: {}]  }
   0x1   :  { %v14_v0 = vstv %s4666_s8  ;;  %s3514_s13 = smov 0  }
   0x2   :  { %15 = vst [vmem:[#allocation4] sm:$0x1] %v14_v0 }
   0x3 LB: > { %s33_s8 = sadd.s32 1, %s3449_s12  ;;  %p2870_p0 = scmp.ge.s32.totalorder %s3453_s13, 1  ;;  %s3453_s13 = sphi %s3514_s13, %s21_s13   ;;  %s3449_s12 = sphi %s3512_s12, %s4792_s12   ;;  %s3445_s11 = sphi %s3510_s11, %s4791_s11  }
   0x4   : > { %p35_p1 = scmp.ge.s32.totalorder %s33_s8, 2  ;;  %p313_p2 = scmp.lt.s32.totalorder %s3453_s13, 3 }
   0x6   : > { %s4794_s8 = smov (%p35_p1, %s33_s8), 0  ;;  %p314_p3 = pnand %p2870_p0, %p313_p2 }
   0x7   : > { %p2871_p4 = scmp.ne.s32.totalorder (!%p314_p3), %s3445_s11, 0 }
   0x8   : > { %317 = sbr.rel (%p314_p3) target bundleno = 1007 (0x3ef), region = 56 }
   0xd   : > { %373 = sbr.rel (%p2871_p4) target bundleno = 615 (0x267), region = 60 }
  0x12   : > { %v2930_v1 = vld [vmem:[%s4659_s1 + $0x30] sm:$0xf]  ;;  %v3228_v2 = vld [vmem:[%s4659_s1 + $0x34] sm:$0xf0]  ;;  %v3227_v3 = vld [vmem:[%s4659_s1 + $0x34] sm:$0xf] }
  0x13   : > { %v2931_v4 = vor.u32 %v3228_v2, %v2930_v1  ;;  %v2932_v5 = vld [vmem:[%s4659_s1 + $0x38] sm:$0xf0]  ;;  %v2922_v6 = vld [vmem:[%s4659_s1 + $0x20] sm:$0xf]  ;;  %v3226_v7 = vld [vmem:[%s4659_s1 + $0x24] sm:$0xf0] }
  0x14   : > { %v2935_v8 = vor.u32 %v3227_v3, %v2932_v5  ;;  %v3225_v9 = vld [vmem:[%s4659_s1 + $0x24] sm:$0xf]  ;;  %v2924_v10 = vld [vmem:[%s4659_s1 + $0x28] sm:$0xf0]  ;;  %v2923_v11 = vor.u32 %v3226_v7, %v2922_v6  ;;  %v2914_v13 = vld [vmem:[%s4659_s1 + $0x10] sm:$0xf] }
  0x15   : > { %507 = vmatpush.bf16.msra.mxu0 %v2931_v4  ;;  %3379 = vmatpush.bf16.msra.mxu2 %v2931_v4  ;;  %v2927_v12 = vor.u32 %v3225_v9, %v2924_v10  ;;  %v3224_v14 = vld [vmem:[%s4659_s1 + $0x14] sm:$0xf0]  ;;  %v3223_v15 = vld [vmem:[%s4659_s1 + $0x14] sm:$0xf]  ;;  %v2916_v16 = vld [vmem:[%s4659_s1 + $0x18] sm:$0xf0] }
  0x16   : > { %556 = vmatpush.bf16.msra.mxu1 %v2935_v8  ;;  %3383 = vmatpush.bf16.msra.mxu3 %v2935_v8  ;;  %v2915_v17 = vor.u32 %v3224_v14, %v2914_v13  ;;  %v2919_v18 = vor.u32 %v3223_v15, %v2916_v16  ;;  %v2906_v19 = vld [vmem:[%s4659_s1] sm:$0xf]  ;;  %v3222_v20 = vld [vmem:[%s4659_s1 + $0x4] sm:$0xf0]  ;;  %v3221_v21 = vld [vmem:[%s4659_s1 + $0x4] sm:$0xf] }
  0x17   : > { %v2908_v22 = vld [vmem:[%s4659_s1 + $0x8] sm:$0xf0]  ;;  %v2907_v23 = vor.u32 %v3222_v20, %v2906_v19  ;;  %v3213_v25 = vld [vmem:[%s4658_s0] sm:$0xff]  ;;  %vm478_vm0 = vcmask 523264   ;;  %v3219_v29 = vld [vmem:[%s4658_s0 + $0x30] sm:$0xff]  ;;  %vm1193_vm7 = vcmask 1043456  }
  0x18   : > { %v2911_v24 = vor.u32 %v3221_v21, %v2908_v22  ;;  %v3218_v26 = vld [vmem:[%s4658_s0 + $0x28] sm:$0xff]  ;;  %v3217_v27 = vld [vmem:[%s4658_s0 + $0x20] sm:$0xff]  ;;  %v3215_v30 = vld [vmem:[%s4658_s0 + $0x10] sm:$0xff]  ;;  %vm1194_vm8 = vsmask.f32 3328 }
  0x19   : > { %508 = vmatpush.bf16.msra.mxu0 %v2923_v11  ;;  %3380 = vmatpush.bf16.msra.mxu2 %v2923_v11  ;;  %v3214_v28 = vld [vmem:[%s4658_s0 + $0x8] sm:$0xff]  ;;  %v3220_v31 = vld [vmem:[%s4658_s0 + $0x38] sm:$0xff]  ;;  %v3259_v35 = vld [vmem:[%s4661_s3 + $0xf0] sm:$0xff] }
  0x1a   : > { %557 = vmatpush.bf16.msra.mxu1 %v2927_v12  ;;  %3384 = vmatpush.bf16.msra.mxu3 %v2927_v12  ;;  %v3236_v32 = vld [vmem:[%s4661_s3 + $0x38] sm:$0xff]  ;;  %v3235_v36 = vld [vmem:[%s4661_s3 + $0x30] sm:$0xff]  ;;  %v3258_v40 = vld [vmem:[%s4661_s3 + $0xe8] sm:$0xff] }
  0x1b   : > { %v3260_v33 = vld [vmem:[%s4661_s3 + $0xf8] sm:$0xff]  ;;  %v3251_v38 = vld [vmem:[%s4661_s3 + $0xb0] sm:$0xff]  ;;  %v3234_v41 = vld [vmem:[%s4661_s3 + $0x28] sm:$0xff] }
  0x1c   : > { %v3252_v34 = vld [vmem:[%s4661_s3 + $0xb8] sm:$0xff]  ;;  %v3243_v39 = vld [vmem:[%s4661_s3 + $0x70] sm:$0xff]  ;;  %v3250_v42 = vld [vmem:[%s4661_s3 + $0xa8] sm:$0xff] }
  0x1d   : > { %509 = vmatpush.bf16.msra.mxu0 %v2915_v17  ;;  %3381 = vmatpush.bf16.msra.mxu2 %v2915_v17  ;;  %v3244_v37 = vld [vmem:[%s4661_s3 + $0x78] sm:$0xff]  ;;  %v3242_v43 = vld [vmem:[%s4661_s3 + $0x68] sm:$0xff]  ;;  %v3233_v45 = vld [vmem:[%s4661_s3 + $0x20] sm:$0xff] }
  0x1e   : > { %558 = vmatpush.bf16.msra.mxu1 %v2919_v18  ;;  %3385 = vmatpush.bf16.msra.mxu3 %v2919_v18  ;;  %v3216_v44 = vld [vmem:[%s4658_s0 + $0x18] sm:$0xff]  ;;  %v3241_v46 = vld [vmem:[%s4661_s3 + $0x60] sm:$0xff]  ;;  %v3231_v49 = vld [vmem:[%s4661_s3 + $0x10] sm:$0xff] }
  0x1f   : > { %v3232_v47 = vld [vmem:[%s4661_s3 + $0x18] sm:$0xff]  ;;  %v3239_v50 = vld [vmem:[%s4661_s3 + $0x50] sm:$0xff]  ;;  %v3249_v51 = vld [vmem:[%s4661_s3 + $0xa0] sm:$0xff] }
  0x20   : > { %v3240_v48 = vld [vmem:[%s4661_s3 + $0x58] sm:$0xff]  ;;  %v3257_v52 = vld [vmem:[%s4661_s3 + $0xe0] sm:$0xff]  ;;  %v3230_v53 = vld [vmem:[%s4661_s3 + $0x8] sm:$0xff] }
  0x21   : > { %510 = vmatpush.bf16.msra.mxu0 %v2907_v23  ;;  %3382 = vmatpush.bf16.msra.mxu2 %v2907_v23  ;;  %v3238_v54 = vld [vmem:[%s4661_s3 + $0x48] sm:$0xff]  ;;  %v3248_v55 = vld [vmem:[%s4661_s3 + $0x98] sm:$0xff]  ;;  %v3229_v57 = vld [vmem:[%s4661_s3] sm:$0xff] }
  0x22   : > { %559 = vmatpush.bf16.msra.mxu1 %v2911_v24  ;;  %3386 = vmatpush.bf16.msra.mxu3 %v2911_v24  ;;  %v3256_v56 = vld [vmem:[%s4661_s3 + $0xd8] sm:$0xff]  ;;  %v3237_v58 = vld [vmem:[%s4661_s3 + $0x40] sm:$0xff]  ;;  %v3247_v59 = vld [vmem:[%s4661_s3 + $0x90] sm:$0xff] }
  0x23   : > { %v3255_v60 = vld [vmem:[%s4661_s3 + $0xd0] sm:$0xff]  ;;  %v3246_v61 = vld [vmem:[%s4661_s3 + $0x88] sm:$0xff]  ;;  %v3245_v63 = vld [vmem:[%s4661_s3 + $0x80] sm:$0xff] }
  0x24   : > { %2936 = vmatmul.msk.bf16.vlgmr.msra.gmra.mxu0 %vm478_vm0, %v3213_v25  ;;  %2941 = vmatmul.msk.bf16.vlgmr.msra.gmra.mxu2 %vm478_vm0, %v3218_v26  ;;  %v3254_v62 = vld [vmem:[%s4661_s3 + $0xc8] sm:$0xff]  ;;  %v3253_v0 = vld [vmem:[%s4661_s3 + $0xc0] sm:$0xff]  ;;  %v3268_v7 = vld [vmem:[%s4661_s3 + $0x138] sm:$0xff] }
  0x25   : > { %2944 = vmatmul.msk.bf16.vlgmr.msra.gmra.mxu1 %vm478_vm0, %v3213_v25  ;;  %2948 = vmatmul.msk.bf16.vlgmr.msra.gmra.mxu3 %vm478_vm0, %v3217_v27  ;;  %v3718_v1 = vld [vmem:[%s4660_s2] sm:$0xff]  ;;  %v602_v2 = vld [vmem:[%s4660_s2 + $0x8] sm:$0xff]  ;;  %v3730_v12 = vld [vmem:[%s4660_s2 + $0x10] sm:$0xff] }
  0x26   : > { %1678 = vmatpush.bf16.msrb.mxu0 %v3236_v32  ;;  %1501 = vmatpush.bf16.msrb.mxu3 %v3260_v33  ;;  %v605_v13 = vld [vmem:[%s4660_s2 + $0x20] sm:$0xff]  ;;  %v604_v16 = vld [vmem:[%s4660_s2 + $0x18] sm:$0xff]  ;;  %vm3773_vm11 = vmand %vm1193_vm7, %vm1194_vm8 }
  0x27   : > { %1452 = vmatpush.bf16.msrb.mxu2 %v3252_v34  ;;  %1727 = vmatpush.bf16.msrb.mxu1 %v3244_v37 }
  0x2a   : > { %1502 = vmatpush.bf16.msrb.mxu3 %v3259_v35  ;;  %1679 = vmatpush.bf16.msrb.mxu0 %v3235_v36 }
  0x2b   : > { %1453 = vmatpush.bf16.msrb.mxu2 %v3251_v38  ;;  %1728 = vmatpush.bf16.msrb.mxu1 %v3243_v39 }
  0x2e   : > { %1503 = vmatpush.bf16.msrb.mxu3 %v3258_v40  ;;  %1680 = vmatpush.bf16.msrb.mxu0 %v3234_v41  ;;  %v606_v40 = vld [vmem:[%s4660_s2 + $0x28] sm:$0xff] }
  0x2f   : > { %1454 = vmatpush.bf16.msrb.mxu2 %v3250_v42  ;;  %1729 = vmatpush.bf16.msrb.mxu1 %v3242_v43  ;;  %v607_v42 = vld [vmem:[%s4660_s2 + $0x30] sm:$0xff] }
  0x32   : > { %1681 = vmatpush.bf16.msrb.mxu0 %v3233_v45  ;;  %1504 = vmatpush.bf16.msrb.mxu3 %v3257_v52 }
  0x33   : > { %1730 = vmatpush.bf16.msrb.mxu1 %v3241_v46  ;;  %1455 = vmatpush.bf16.msrb.mxu2 %v3249_v51  ;;  %v3276_v46 = vld [vmem:[%s4661_s3 + $0x178] sm:$0xff] }
  0x34   : > { %2937 = vmatmul.msk.bf16.gmra.mxu0 %vm478_vm0, %v3214_v28  ;;  %2942 = vmatmul.msk.bf16.gmra.mxu2 %vm478_vm0, %v3219_v29 }
  0x35   : > { %2945 = vmatmul.msk.bf16.gmra.mxu1 %vm478_vm0, %v3214_v28  ;;  %2949 = vmatmul.msk.bf16.gmra.mxu3 %vm478_vm0, %v3218_v26 }
  0x36   : > { %1682 = vmatpush.bf16.msrb.mxu0 %v3232_v47  ;;  %1505 = vmatpush.bf16.msrb.mxu3 %v3256_v56 }
  0x37   : > { %1731 = vmatpush.bf16.msrb.mxu1 %v3240_v48  ;;  %1456 = vmatpush.bf16.msrb.mxu2 %v3248_v55 }
  0x3a   : > { %1683 = vmatpush.bf16.msrb.mxu0 %v3231_v49  ;;  %1506 = vmatpush.bf16.msrb.mxu3 %v3255_v60 }
  0x3b   : > { %1732 = vmatpush.bf16.msrb.mxu1 %v3239_v50  ;;  %1457 = vmatpush.bf16.msrb.mxu2 %v3247_v59 }
  0x3e   : > { %1684 = vmatpush.bf16.msrb.mxu0 %v3230_v53  ;;  %1507 = vmatpush.bf16.msrb.mxu3 %v3254_v62 }
  0x3f   : > { %1733 = vmatpush.bf16.msrb.mxu1 %v3238_v54  ;;  %1458 = vmatpush.bf16.msrb.mxu2 %v3246_v61 }
  0x42   : > { %1685 = vmatpush.bf16.msrb.mxu0 %v3229_v57  ;;  %1508 = vmatpush.bf16.msrb.mxu3 %v3253_v0 }
  0x43   : > { %1734 = vmatpush.bf16.msrb.mxu1 %v3237_v58  ;;  %1459 = vmatpush.bf16.msrb.mxu2 %v3245_v63 }
  0x44   : > { %2938 = vmatmul.msk.bf16.gmra.mxu0 %vm478_vm0, %v3215_v30  ;;  %2943 = vmatmul.msk.bf16.gmra.mxu2 %vm478_vm0, %v3220_v31 }
  0x45   : > { %2946 = vmatmul.msk.bf16.gmra.mxu1 %vm478_vm0, %v3215_v30  ;;  %2950 = vmatmul.msk.bf16.gmra.mxu3 %vm478_vm0, %v3219_v29 }
  0x46   : > { %1985 = vmatpush.bf16.msra.mxu3 %v3276_v46 }
  0x47   : > { %1936 = vmatpush.bf16.msra.mxu2 %v3268_v7 }
  0x54   : > { %2939 = vmatmul.msk.bf16.gmra.mxu0 %vm478_vm0, %v3216_v44 }
  0x55   : > { %2947 = vmatmul.msk.bf16.gmra.mxu1 %vm478_vm0, %v3216_v44  ;;  %2951 = vmatmul.msk.bf16.gmra.mxu3 %vm478_vm0, %v3220_v31 }
  0x64   : > { %2940 = vmatmul.msk.bf16.gmra.mxu0 %vm478_vm0, %v3217_v27 }
  0xa1   : > { %v512_v3 = vpop.f32.mrf.mxu0 }
  0xa2   : > { %v617_v4 = vadd.f32 %v3718_v1, %v512_v3  ;;  %v561_v5 = vpop.f32.mrf.mxu1 }
  0xa3   : > { %v618_v6 = vadd.f32 %v602_v2, %v561_v5 }
  0xa4   : > { %vm649_vm1 = vcmp.ge.f32.partialorder %v617_v4, 0.0  ;;  %v681_v8 = vmul.f32 0.2, %v617_v4 }
  0xa5   : > { %vm650_vm2 = vcmp.ge.f32.partialorder %v618_v6, 0.0  ;;  %v682_v9 = vmul.f32 0.2, %v618_v6 }
  0xa6   : > { %v713_v10 = vsel %vm649_vm1, %v617_v4, %v681_v8 }
  0xa7   : > { %v714_v11 = vsel %vm650_vm2, %v618_v6, %v682_v9  ;;  %v537_v14 = vpop.f32.mrf.mxu2 }
  0xa8   : > { %v745_v15 = vpack.c.bf16 %v714_v11, %v713_v10  ;;  %v581_v17 = vpop.f32.mrf.mxu3  ;;  %v637_v18 = vadd.f32 %v605_v13, %v537_v14 }
  0xa9   : > { %v514_v19 = vpop.f32.mrf.mxu0  ;;  %v634_v20 = vadd.f32 %v602_v2, %v581_v17 }
  0xaa   : > { %v3738_v21 = vunpack.c.l.b16 %v745_v15  ;;  %v3740_v22 = vunpack.c.h.b16 %v745_v15  ;;  %v619_v23 = vadd.f32 %v3730_v12, %v514_v19  ;;  %v563_v24 = vpop.f32.mrf.mxu1  ;;  %vm669_vm3 = vcmp.ge.f32.partialorder %v637_v18, 0.0  ;;  %v608_v15 = vld [vmem:[%s4660_s2 + $0x38] sm:$0xff] }
  0xab   : > { %v620_v25 = vadd.f32 %v604_v16, %v563_v24  ;;  %vm666_vm4 = vcmp.ge.f32.partialorder %v634_v20, 0.0  ;;  %v698_v26 = vmul.f32 0.2, %v634_v20  ;;  %v701_v27 = vmul.f32 0.2, %v637_v18 }
  0xac   : > { %4702 = vst [vmem:[#allocation5_spill] sm:$0xff] %v3738_v21  ;;  %v841_v28 = vpack.c.b16 %v3738_v21, %v3738_v21  ;;  %v842_v29 = vpack.c.b16 %v3740_v22, %v3740_v22  ;;  %vm651_vm5 = vcmp.ge.f32.partialorder %v619_v23, 0.0  ;;  %v683_v30 = vmul.f32 0.2, %v619_v23 }
  0xad   : > { %4703 = vst [vmem:[#allocation6_spill] sm:$0xff] %v3740_v22  ;;  %vm652_vm6 = vcmp.ge.f32.partialorder %v620_v25, 0.0  ;;  %v684_v31 = vmul.f32 0.2, %v620_v25  ;;  %v3747_v35 = vsel %vm666_vm4, %v634_v20, %v698_v26  ;;  %v3750_v36 = vsel %vm669_vm3, %v637_v18, %v701_v27 }
  0xae   : > { %v715_v32 = vsel %vm651_vm5, %v619_v23, %v683_v30  ;;  %v876_v33 = vshll.u32 %v841_v28, 16  ;;  %v883_v37 = vshll.u32 %v842_v29, 16  ;;  %v874_v43 = vshrl.u32 %v841_v28, 16 }
  0xaf   : > { %v716_v34 = vsel %vm652_vm6, %v620_v25, %v684_v31  ;;  %v539_v38 = vpop.f32.mrf.mxu2  ;;  %v881_v45 = vshrl.u32 %v842_v29, 16 }
  0xb0   : > { %v746_v39 = vpack.c.bf16 %v716_v34, %v715_v32  ;;  %v583_v41 = vpop.f32.mrf.mxu3  ;;  %v878_v44 = vrot.slane %v876_v33, 1  ;;  %v1129_v49 = vrot.slane %v876_v33, 5  ;;  %v885_v50 = vrot.slane %v883_v37, 1  ;;  %v3267_v34 = vld [vmem:[%s4661_s3 + $0x130] sm:$0xff] }
  0xb1   : > { %v517_v47 = vpop.f32.mrf.mxu0  ;;  %v636_v48 = vadd.f32 %v604_v16, %v583_v41  ;;  %v3761_v51 = vadd.f32 %v607_v42, %v539_v38  ;;  %v1130_v56 = vrot.slane %v883_v37, 5  ;;  %1937 = vmatpush.bf16.msra.mxu2 %v3267_v34  ;;  %v612_v34 = vld [vmem:[%s4660_s2 + $0x58] sm:$0xff] }
  0xb2   : > { %v621_v52 = vadd.f32 %v605_v13, %v517_v47  ;;  %v566_v53 = vpop.f32.mrf.mxu1  ;;  %v3763_v54 = vunpack.c.l.b16 %v746_v39  ;;  %v3765_v55 = vunpack.c.h.b16 %v746_v39  ;;  %v879_v59 = vor.u32 %v878_v44, %v874_v43  ;;  %v3292_v43 = vld [vmem:[%s4661_s3 + $0x1f8] sm:$0xff] }
  0xb3   : > { %v622_v57 = vadd.f32 %v606_v40, %v566_v53  ;;  %vm668_vm9 = vcmp.ge.f32.partialorder %v636_v48, 0.0  ;;  %v700_v58 = vmul.f32 0.2, %v636_v48  ;;  %v886_v3 = vor.u32 %v885_v50, %v881_v45  ;;  %2259 = vmatpush.bf16.msra.mxu1 %v3292_v43 }
  0xb4   : > { %4704 = vst [vmem:[#allocation7_spill] sm:$0xff] %v3763_v54  ;;  %vm653_vm10 = vcmp.ge.f32.partialorder %v621_v52, 0.0  ;;  %v685_v60 = vmul.f32 0.2, %v621_v52  ;;  %v843_v61 = vpack.c.b16 %v3763_v54, %v3763_v54  ;;  %v1550_v62 = vpack.c.b16 %v3763_v54, %v3738_v21 }
  0xb5   : > { %4705 = vst [vmem:[#allocation8_spill] sm:$0xff] %v3765_v55  ;;  %vm654_vm12 = vcmp.ge.f32.partialorder %v622_v57, 0.0  ;;  %v686_v0 = vmul.f32 0.2, %v622_v57  ;;  %v844_v2 = vpack.c.b16 %v3765_v55, %v3765_v55  ;;  %v3779_v5 = vsel %vm668_vm9, %v636_v48, %v700_v58 }
  0xb6   : > { %v717_v4 = vsel %vm653_vm10, %v621_v52, %v685_v60  ;;  %1686 = vmatmul.bf16.vlgmr.msrb.gmra.mxu0 %v1550_v62  ;;  %v1551_v6 = vpack.c.b16 %v3765_v55, %v3740_v22  ;;  %v890_v7 = vshll.u32 %v843_v61, 16  ;;  %v888_v9 = vshrl.u32 %v843_v61, 16  ;;  %v609_v52 = vld [vmem:[%s4660_s2 + $0x40] sm:$0xff]  ;;  %v611_v60 = vld [vmem:[%s4660_s2 + $0x50] sm:$0xff] }
  0xb7   : > { %v718_v8 = vsel %vm654_vm12, %v622_v57, %v686_v0  ;;  %v1196_v10 = vsel %vm3773_vm11, %v879_v59, %v1129_v49  ;;  %v897_v11 = vshll.u32 %v844_v2, 16  ;;  %v542_v13 = vpop.f32.mrf.mxu2  ;;  %v895_v19 = vshrl.u32 %v844_v2, 16  ;;  %v610_v57 = vld [vmem:[%s4660_s2 + $0x48] sm:$0xff] }
  0xb8   : > { %v747_v14 = vpack.c.bf16 %v718_v8, %v717_v4  ;;  %1735 = vmatmul.bf16.vlgmr.msrb.gmra.mxu1 %v1551_v6  ;;  %v586_v16 = vpop.f32.mrf.mxu3  ;;  %v892_v17 = vrot.slane %v890_v7, 1  ;;  %v1131_v18 = vrot.slane %v890_v7, 5  ;;  %v3788_v24 = vunpack.c.l.b16 %v1196_v10 }
  0xb9   : > { %v519_v20 = vpop.f32.mrf.mxu0  ;;  %v638_v23 = vadd.f32 %v606_v40, %v586_v16  ;;  %v899_v25 = vrot.slane %v897_v11, 1  ;;  %v1132_v26 = vrot.slane %v897_v11, 5  ;;  %v1197_v30 = vsel %vm3773_vm11, %v886_v3, %v1130_v56  ;;  %v3848_v11 = vld [vmem:[%s4661_s3 + $0x1b8] sm:$0xff] }
  0xba   : > { %4708 = vst [vmem:[#allocation9_spill] sm:$0xff] %v3788_v24  ;;  %v623_v27 = vadd.f32 %v607_v42, %v519_v20  ;;  %v568_v28 = vpop.f32.mrf.mxu1  ;;  %v893_v29 = vor.u32 %v892_v17, %v888_v9  ;;  %vm671_vm13 = vcmp.ge.f32.partialorder %v3761_v51, 0.0  ;;  %v703_v39 = vmul.f32 0.2, %v3761_v51  ;;  %2210 = vmatpush.bf16.msra.mxu0 %v3848_v11 }
  0xbb   : > { %v624_v31 = vadd.f32 %v608_v15, %v568_v28  ;;  %vm670_vm14 = vcmp.ge.f32.partialorder %v638_v23, 0.0  ;;  %v702_v32 = vmul.f32 0.2, %v638_v23  ;;  %v900_v33 = vor.u32 %v899_v25, %v895_v19 }
  0xbc   : > { %vm655_vm15 = vcmp.ge.f32.partialorder %v623_v27, 0.0  ;;  %v687_v37 = vmul.f32 0.2, %v623_v27  ;;  %v1198_v38 = vsel %vm3773_vm11, %v893_v29, %v1131_v18  ;;  %v3809_v47 = vunpack.c.l.b16 %v1197_v30 }
  0xbd   : > { %vm656_vm0 = vcmp.ge.f32.partialorder %v624_v31, 0.0  ;;  %v688_v40 = vmul.f32 0.2, %v624_v31  ;;  %v734_v41 = vsel %vm670_vm14, %v638_v23, %v702_v32  ;;  %v3799_v42 = vunpack.c.l.b16 %v1198_v38 }
  0xbe   : > { %v719_v44 = vsel %vm655_vm15, %v623_v27, %v687_v37  ;;  %v3805_v45 = vpack.c.bf16 %v734_v41, %v3750_v36  ;;  %v1199_v46 = vsel %vm3773_vm11, %v900_v33, %v1132_v26  ;;  %4709 = vst [vmem:[#allocation10_spill] sm:$0xff] %v3809_v47  ;;  %v3818_v53 = vunpack.c.l.b16 %v747_v14 }
  0xbf   : > { %v720_v48 = vsel %vm656_vm0, %v624_v31, %v688_v40  ;;  %v1324_v49 = vpack.c.b16 %v3799_v42, %v3788_v24  ;;  %v3813_v50 = vunpack.c.l.b16 %v1199_v46  ;;  %v735_v56 = vsel %vm671_vm13, %v3761_v51, %v703_v39  ;;  %v544_v62 = vpop.f32.mrf.mxu2 }
  0xc0   : > { %4711 = vst [vmem:[#allocation12_spill] sm:$0xff] %v3818_v53  ;;  %v748_v36 = vpack.c.bf16 %v720_v48, %v719_v44  ;;  %v588_v58 = vpop.f32.mrf.mxu3  ;;  %v3826_v59 = vunpack.c.h.b16 %v747_v14  ;;  %v641_v61 = vadd.f32 %v609_v52, %v542_v13  ;;  %v845_v51 = vpack.c.b16 %v3818_v53, %v3818_v53  ;;  %v3275_v13 = vld [vmem:[%s4661_s3 + $0x170] sm:$0xff] }
  0xc1   : > { %4710 = vst [vmem:[#allocation11_spill] sm:$0xff] %v3813_v50  ;;  %1460 = vmatmul.bf16.vlgmr.msrb.gmra.mxu2 %v1324_v49  ;;  %v1325_v0 = vpack.c.b16 %v3813_v50, %v3809_v47  ;;  %v522_v2 = vpop.f32.mrf.mxu0  ;;  %v640_v3 = vadd.f32 %v608_v15, %v588_v58  ;;  %v3835_v4 = vadd.f32 %v611_v60, %v544_v62  ;;  %v4087_v47 = vunpack.c.l.b16 %v3805_v45 }
  0xc2   : > { %4712 = vst [vmem:[#allocation13_spill] sm:$0xff] %v3826_v59  ;;  %v625_v6 = vadd.f32 %v609_v52, %v522_v2  ;;  %v571_v7 = vpop.f32.mrf.mxu1  ;;  %v3837_v8 = vunpack.c.l.b16 %v748_v36  ;;  %v3839_v9 = vunpack.c.h.b16 %v748_v36  ;;  %v3843_v10 = vpack.c.b16 %v3826_v59, %v3826_v59  ;;  %1986 = vmatpush.bf16.msra.mxu3 %v3275_v13 }
  0xc3   : > { %1509 = vmatmul.bf16.vlgmr.msrb.gmra.mxu3 %v1325_v0  ;;  %v626_v14 = vadd.f32 %v610_v57, %v571_v7  ;;  %vm672_vm1 = vcmp.ge.f32.partialorder %v640_v3, 0.0  ;;  %v704_v15 = vmul.f32 0.2, %v640_v3  ;;  %vm673_vm4 = vcmp.ge.f32.partialorder %v641_v61, 0.0 }
  0xc4   : > { %4713 = vst [vmem:[#allocation14_spill] sm:$0xff] %v3837_v8  ;;  %vm657_vm2 = vcmp.ge.f32.partialorder %v625_v6, 0.0  ;;  %v689_v17 = vmul.f32 0.2, %v625_v6  ;;  %v847_v18 = vpack.c.b16 %v3837_v8, %v3837_v8  ;;  %v1552_v19 = vpack.c.b16 %v3837_v8, %v3818_v53 }
  0xc5   : > { %4714 = vst [vmem:[#allocation15_spill] sm:$0xff] %v3839_v9  ;;  %vm658_vm3 = vcmp.ge.f32.partialorder %v626_v14, 0.0  ;;  %v690_v20 = vmul.f32 0.2, %v626_v14  ;;  %v736_v23 = vsel %vm672_vm1, %v640_v3, %v704_v15  ;;  %v3862_v25 = vpack.c.b16 %v3839_v9, %v3839_v9 }
  0xc6   : > { %v721_v26 = vsel %vm657_vm2, %v625_v6, %v689_v17  ;;  %v3864_v27 = vpack.c.bf16 %v736_v23, %v735_v56  ;;  %1691 = vmatmul.bf16.gmra.mxu0 %v1552_v19  ;;  %v1553_v28 = vpack.c.b16 %v3839_v9, %v3826_v59  ;;  %v705_v30 = vmul.f32 0.2, %v641_v61  ;;  %v3291_v17 = vld [vmem:[%s4661_s3 + $0x1f0] sm:$0xff] }
  0xc7   : > { %v722_v29 = vsel %vm658_vm3, %v626_v14, %v690_v20  ;;  %v902_v31 = vshrl.u32 %v845_v51, 16  ;;  %v904_v32 = vshll.u32 %v845_v51, 16  ;;  %v916_v38 = vshrl.u32 %v847_v18, 16  ;;  %2260 = vmatpush.bf16.msra.mxu1 %v3291_v17 }
  0xc8   : > { %v3868_v33 = vpack.c.bf16 %v722_v29, %v721_v26  ;;  %1740 = vmatmul.bf16.gmra.mxu1 %v1553_v28  ;;  %v591_v37 = vpop.f32.mrf.mxu3  ;;  %v918_v39 = vshll.u32 %v847_v18, 16  ;;  %v909_v40 = vshrl.u32 %v3843_v10, 16  ;;  %v737_v43 = vsel %vm673_vm4, %v641_v61, %v705_v30  ;;  %v613_v26 = vld [vmem:[%s4660_s2 + $0x60] sm:$0xff] }
  0xc9   : > { %v524_v41 = vpop.f32.mrf.mxu0  ;;  %v642_v44 = vadd.f32 %v610_v57, %v591_v37  ;;  %v906_v46 = vrot.slane %v904_v32, 1  ;;  %v1133_v48 = vrot.slane %v904_v32, 5  ;;  %v911_v58 = vshll.u32 %v3843_v10, 16  ;;  %v614_v32 = vld [vmem:[%s4660_s2 + $0x68] sm:$0xff] }
  0xca   : > { %v627_v49 = vadd.f32 %v611_v60, %v524_v41  ;;  %v573_v52 = vpop.f32.mrf.mxu1  ;;  %v920_v36 = vrot.slane %v918_v39, 1  ;;  %v1135_v56 = vrot.slane %v918_v39, 5  ;;  %v3266_v60 = vld [vmem:[%s4661_s3 + $0x128] sm:$0xff]  ;;  %v923_v23 = vshrl.u32 %v3862_v25, 16 }
  0xcb   : > { %v628_v62 = vadd.f32 %v612_v34, %v573_v52  ;;  %vm674_vm5 = vcmp.ge.f32.partialorder %v642_v44, 0.0  ;;  %v706_v0 = vmul.f32 0.2, %v642_v44  ;;  %v907_v2 = vor.u32 %v906_v46, %v902_v31  ;;  %1938 = vmatpush.bf16.msra.mxu2 %v3266_v60  ;;  %v3274_v39 = vld [vmem:[%s4661_s3 + $0x168] sm:$0xff] }
  0xcc   : > { %vm659_vm6 = vcmp.ge.f32.partialorder %v627_v49, 0.0  ;;  %v691_v3 = vmul.f32 0.2, %v627_v49  ;;  %v921_v51 = vor.u32 %v920_v36, %v916_v38  ;;  %v913_v6 = vrot.slane %v911_v58, 1  ;;  %v3904_v38 = vld [vmem:[%s4661_s3 + $0x1b0] sm:$0xff]  ;;  %1987 = vmatpush.bf16.msra.mxu3 %v3274_v39 }
  0xcd   : > { %vm660_vm7 = vcmp.ge.f32.partialorder %v628_v62, 0.0  ;;  %v692_v7 = vmul.f32 0.2, %v628_v62  ;;  %v738_v61 = vsel %vm674_vm5, %v642_v44, %v706_v0  ;;  %v1200_v57 = vsel %vm3773_vm11, %v907_v2, %v1133_v48  ;;  %2211 = vmatpush.bf16.msra.mxu0 %v3904_v38 }
  0xce   : > { %v723_v13 = vsel %vm659_vm6, %v627_v49, %v691_v3  ;;  %v3880_v10 = vpack.c.bf16 %v738_v61, %v737_v43  ;;  %v1202_v14 = vsel %vm3773_vm11, %v921_v51, %v1135_v56  ;;  %v3884_v15 = vunpack.c.l.b16 %v1200_v57  ;;  %v547_v57 = vpop.f32.mrf.mxu2 }
  0xcf   : > { %v724_v18 = vsel %vm660_vm7, %v628_v62, %v692_v7  ;;  %v3889_v19 = vunpack.c.l.b16 %v1202_v14  ;;  %v914_v20 = vor.u32 %v913_v6, %v909_v40  ;;  %v925_v30 = vshll.u32 %v3862_v25, 16 }
  0xd0   : > { %v750_v28 = vpack.c.bf16 %v724_v18, %v723_v13  ;;  %v1134_v31 = vrot.slane %v911_v58, 5  ;;  %v593_v37 = vpop.f32.mrf.mxu3  ;;  %vm675_vm8 = vcmp.ge.f32.partialorder %v3835_v4, 0.0  ;;  %v707_v41 = vmul.f32 0.2, %v3835_v4  ;;  %v3937_v18 = vld [vmem:[%s4660_s2 + $0x70] sm:$0xff] }
  0xd1   : > { %4715 = vst [vmem:[#allocation16_spill] sm:$0xff] %v3889_v19  ;;  %v1326_v40 = vpack.c.b16 %v3889_v19, %v3884_v15  ;;  %v527_v25 = vpop.f32.mrf.mxu0  ;;  %v644_v43 = vadd.f32 %v612_v34, %v593_v37  ;;  %v927_v44 = vrot.slane %v925_v30, 1  ;;  %v1136_v46 = vrot.slane %v925_v30, 5 }
  0xd2   : > { %v1201_v48 = vsel %vm3773_vm11, %v914_v20, %v1134_v31  ;;  %v629_v49 = vadd.f32 %v613_v26, %v527_v25  ;;  %v576_v52 = vpop.f32.mrf.mxu1  ;;  %v739_v56 = vsel %vm675_vm8, %v3835_v4, %v707_v41  ;;  %v3922_v51 = vunpack.c.l.b16 %v3868_v33 }
  0xd3   : > { %1465 = vmatmul.bf16.gmra.mxu2 %v1326_v40  ;;  %v3916_v36 = vunpack.c.l.b16 %v1201_v48  ;;  %v630_v58 = vadd.f32 %v614_v32, %v576_v52  ;;  %vm676_vm9 = vcmp.ge.f32.partialorder %v644_v43, 0.0  ;;  %v928_v62 = vor.u32 %v927_v44, %v923_v23 }
  0xd4   : > { %vm661_vm10 = vcmp.ge.f32.partialorder %v629_v49, 0.0  ;;  %v693_v34 = vmul.f32 0.2, %v629_v49  ;;  %v708_v0 = vmul.f32 0.2, %v644_v43  ;;  %4717 = vst [vmem:[#allocation18_spill] sm:$0xff] %v3922_v51  ;;  %v3926_v4 = vunpack.c.l.b16 %v750_v28 }
  0xd5   : > { %4716 = vst [vmem:[#allocation17_spill] sm:$0xff] %v3916_v36  ;;  %vm662_vm12 = vcmp.ge.f32.partialorder %v630_v58, 0.0  ;;  %v694_v3 = vmul.f32 0.2, %v630_v58  ;;  %v1203_v6 = vsel %vm3773_vm11, %v928_v62, %v1136_v46  ;;  %v849_v17 = vpack.c.b16 %v3922_v51, %v3922_v51 }
  0xd6   : > { %v725_v7 = vsel %vm661_vm10, %v629_v49, %v693_v34  ;;  %v740_v61 = vsel %vm676_vm9, %v644_v43, %v708_v0  ;;  %4718 = vst [vmem:[#allocation19_spill] sm:$0xff] %v3926_v4  ;;  %v3928_v60 = vunpack.c.l.b16 %v1203_v6  ;;  %v851_v23 = vpack.c.b16 %v3926_v4, %v3926_v4  ;;  %v616_v43 = vld [vmem:[%s4660_s2 + $0x78] sm:$0xff]  ;;  %v3265_v6 = vld [vmem:[%s4661_s3 + $0x120] sm:$0xff] }
  0xd7   : > { %v726_v13 = vsel %vm662_vm12, %v630_v58, %v694_v3  ;;  %v3930_v14 = vpack.c.bf16 %v740_v61, %v739_v56  ;;  %v1554_v30 = vpack.c.b16 %v3926_v4, %v3922_v51  ;;  %v3946_v31 = vunpack.c.h.b16 %v3868_v33  ;;  %1939 = vmatpush.bf16.msra.mxu2 %v3265_v6 }
  0xd8   : > { %4719 = vst [vmem:[#allocation20_spill] sm:$0xff] %v3928_v60  ;;  %v3939_v20 = vpack.c.bf16 %v726_v13, %v725_v7  ;;  %v596_v37 = vpop.f32.mrf.mxu3  ;;  %v1327_v39 = vpack.c.b16 %v3928_v60, %v3916_v36  ;;  %v3950_v40 = vunpack.c.h.b16 %v750_v28  ;;  %v645_v41 = vadd.f32 %v613_v26, %v547_v57  ;;  %v3290_v13 = vld [vmem:[%s4661_s3 + $0x1e8] sm:$0xff] }
  0xd9   : > { %4720 = vst [vmem:[#allocation21_spill] sm:$0xff] %v3946_v31  ;;  %v529_v25 = vpop.f32.mrf.mxu0  ;;  %v646_v44 = vadd.f32 %v614_v32, %v596_v37  ;;  %1696 = vmatmul.bf16.gmra.mxu0 %v1554_v30  ;;  %v850_v46 = vpack.c.b16 %v3946_v31, %v3946_v31  ;;  %v930_v49 = vshrl.u32 %v849_v17, 16  ;;  %v932_v52 = vshll.u32 %v849_v17, 16  ;;  %v3971_v17 = vld [vmem:[%s4661_s3 + $0x1a8] sm:$0xff]  ;;  %2261 = vmatpush.bf16.msra.mxu1 %v3290_v13 }
  0xda   : > { %4721 = vst [vmem:[#allocation22_spill] sm:$0xff] %v3950_v40  ;;  %v631_v33 = vadd.f32 %v3937_v18, %v529_v25  ;;  %v578_v48 = vpop.f32.mrf.mxu1  ;;  %1514 = vmatmul.bf16.gmra.mxu3 %v1327_v39  ;;  %v852_v28 = vpack.c.b16 %v3950_v40, %v3950_v40  ;;  %v1555_v26 = vpack.c.b16 %v3950_v40, %v3946_v31  ;;  %vm677_vm13 = vcmp.ge.f32.partialorder %v645_v41, 0.0 }
  0xdb   : > { %v709_v56 = vmul.f32 0.2, %v645_v41  ;;  %v632_v58 = vadd.f32 %v616_v43, %v578_v48  ;;  %vm678_vm15 = vcmp.ge.f32.partialorder %v646_v44, 0.0  ;;  %v710_v34 = vmul.f32 0.2, %v646_v44  ;;  %2212 = vmatpush.bf16.msra.mxu0 %v3971_v17 }
  0xdc   : > { %vm663_vm14 = vcmp.ge.f32.partialorder %v631_v33, 0.0  ;;  %v695_v32 = vmul.f32 0.2, %v631_v33  ;;  %1745 = vmatmul.bf16.gmra.mxu1 %v1555_v26  ;;  %v934_v0 = vrot.slane %v932_v52, 1  ;;  %v944_v3 = vshrl.u32 %v851_v23, 16 }
  0xdd   : > { %v741_v62 = vsel %vm677_vm13, %v645_v41, %v709_v56  ;;  %vm664_vm0 = vcmp.ge.f32.partialorder %v632_v58, 0.0  ;;  %v696_v61 = vmul.f32 0.2, %v632_v58  ;;  %v946_v57 = vshll.u32 %v851_v23, 16  ;;  %v3273_v41 = vld [vmem:[%s4661_s3 + $0x160] sm:$0xff]  ;;  %v549_v56 = vpop.f32.mrf.mxu2 }
  0xde   : > { %v727_v7 = vsel %vm663_vm14, %v631_v33, %v695_v32  ;;  %v742_v30 = vsel %vm678_vm15, %v646_v44, %v710_v34  ;;  %v935_v37 = vor.u32 %v934_v0, %v930_v49  ;;  %v1137_v39 = vrot.slane %v932_v52, 5  ;;  %1988 = vmatpush.bf16.msra.mxu3 %v3273_v41 }
  0xdf   : > { %v937_v25 = vshrl.u32 %v850_v46, 16  ;;  %v728_v33 = vsel %vm664_vm0, %v632_v58, %v696_v61  ;;  %v3976_v23 = vpack.c.bf16 %v742_v30, %v741_v62  ;;  %v948_v48 = vrot.slane %v946_v57, 1 }
  0xe0   : > { %v1139_v26 = vrot.slane %v946_v57, 5  ;;  %v752_v32 = vpack.c.bf16 %v728_v33, %v727_v7  ;;  %v1204_v44 = vsel %vm3773_vm11, %v935_v37, %v1137_v39  ;;  %v939_v49 = vshll.u32 %v850_v46, 16  ;;  %v598_v0 = vpop.f32.mrf.mxu3 }
  0xe1   : > { %v951_v52 = vshrl.u32 %v852_v28, 16  ;;  %v532_v34 = vpop.f32.mrf.mxu0  ;;  %v3982_v6 = vunpack.c.l.b16 %v3976_v23  ;;  %v949_v58 = vor.u32 %v948_v48, %v944_v3  ;;  %v3984_v62 = vunpack.c.l.b16 %v1204_v44 }
  0xe2   : > { %v953_v61 = vshll.u32 %v852_v28, 16  ;;  %v941_v57 = vrot.slane %v939_v49, 1  ;;  %v1138_v13 = vrot.slane %v939_v49, 5  ;;  %v633_v30 = vadd.f32 %v3718_v1, %v532_v34 }
  0xe3   : > { %4722 = vst [vmem:[#allocation23_spill] sm:$0xff] %v3984_v62  ;;  %v647_v7 = vadd.f32 %v3937_v18, %v549_v56  ;;  %v1206_v46 = vsel %vm3773_vm11, %v949_v58, %v1139_v26  ;;  %v648_v33 = vadd.f32 %v616_v43, %v598_v0  ;;  %v4004_v0 = vunpack.c.l.b16 %v3939_v20 }
  0xe4   : > { %v955_v37 = vrot.slane %v953_v61, 1  ;;  %v1140_v39 = vrot.slane %v953_v61, 5  ;;  %v3990_v41 = vunpack.c.l.b16 %v1206_v46  ;;  %v942_v16 = vor.u32 %v941_v57, %v937_v25 }
  0xe5   : > { %vm665_vm1 = vcmp.ge.f32.partialorder %v633_v30, 0.0  ;;  %v697_v3 = vmul.f32 0.2, %v633_v30  ;;  %vm679_vm2 = vcmp.ge.f32.partialorder %v647_v7, 0.0  ;;  %v711_v28 = vmul.f32 0.2, %v647_v7 }
  0xe6   : > { %v956_v48 = vor.u32 %v955_v37, %v951_v52  ;;  %vm680_vm3 = vcmp.ge.f32.partialorder %v648_v33, 0.0  ;;  %v1328_v1 = vpack.c.b16 %v3990_v41, %v3984_v62  ;;  %v1205_v18 = vsel %vm3773_vm11, %v942_v16, %v1138_v13  ;;  %4724 = vst [vmem:[#allocation25_spill] sm:$0xff] %v4004_v0 }
  0xe7   : > { %v729_v56 = vsel %vm665_vm1, %v633_v30, %v697_v3  ;;  %v712_v26 = vmul.f32 0.2, %v648_v33  ;;  %v3998_v44 = vunpack.c.l.b16 %v1205_v18  ;;  %v743_v49 = vsel %vm679_vm2, %v647_v7, %v711_v28  ;;  %v3264_v28 = vld [vmem:[%s4661_s3 + $0x118] sm:$0xff] }
  0xe8   : > { %v1207_v43 = vsel %vm3773_vm11, %v956_v48, %v1140_v39  ;;  %v753_v25 = vpack.c.bf16 %v3747_v35, %v729_v56  ;;  %1470 = vmatmul.bf16.gmra.mxu2 %v1328_v1  ;;  %v4006_v58 = vunpack.c.l.b16 %v752_v32  ;;  %v4011_v57 = vunpack.c.h.b16 %v3939_v20 }
  0xe9   : > { %4723 = vst [vmem:[#allocation24_spill] sm:$0xff] %v3998_v44  ;;  %v4001_v52 = vunpack.c.l.b16 %v1207_v43  ;;  %v744_v34 = vsel %vm680_vm3, %v648_v33, %v712_v26  ;;  %v534_v16 = vpop.f32.mrf.mxu0  ;;  %v4013_v13 = vunpack.c.h.b16 %v752_v32  ;;  %v853_v7 = vpack.c.b16 %v4004_v0, %v4004_v0  ;;  %v3289_v43 = vld [vmem:[%s4661_s3 + $0x1e0] sm:$0xff]  ;;  %1940 = vmatpush.bf16.msra.mxu2 %v3264_v28 }
  0xea   : > { %4725 = vst [vmem:[#allocation26_spill] sm:$0xff] %v4006_v58  ;;  %v4008_v61 = vpack.c.bf16 %v744_v34, %v743_v49  ;;  %v635_v35 = vadd.f32 %v3730_v12, %v534_v16  ;;  %v855_v46 = vpack.c.b16 %v4006_v58, %v4006_v58  ;;  %v1556_v37 = vpack.c.b16 %v4006_v58, %v4004_v0  ;;  %v4039_v49 = vld [vmem:[%s4661_s3 + $0x1a0] sm:$0xff] }
  0xeb   : > { %4726 = vst [vmem:[#allocation27_spill] sm:$0xff] %v4011_v57  ;;  %v1329_v30 = vpack.c.b16 %v4001_v52, %v3998_v44  ;;  %v854_v20 = vpack.c.b16 %v4011_v57, %v4011_v57  ;;  %v856_v32 = vpack.c.b16 %v4013_v13, %v4013_v13  ;;  %v1557_v12 = vpack.c.b16 %v4013_v13, %v4011_v57 }
  0xec   : > { %4727 = vst [vmem:[#allocation28_spill] sm:$0xff] %v4013_v13  ;;  %vm667_vm4 = vcmp.ge.f32.partialorder %v635_v35, 0.0  ;;  %1701 = vmatmul.bf16.gmra.mxu0 %v1556_v37  ;;  %v699_v39 = vmul.f32 0.2, %v635_v35  ;;  %v958_v33 = vshrl.u32 %v853_v7, 16  ;;  %v960_v3 = vshll.u32 %v853_v7, 16  ;;  %2262 = vmatpush.bf16.msra.mxu1 %v3289_v43 }
  0xed   : > { %1519 = vmatmul.bf16.gmra.mxu3 %v1329_v30  ;;  %v972_v48 = vshrl.u32 %v855_v46, 16  ;;  %1750 = vmatmul.bf16.gmra.mxu1 %v1557_v12  ;;  %v974_v1 = vshll.u32 %v855_v46, 16  ;;  %v965_v18 = vshrl.u32 %v854_v20, 16  ;;  %v967_v56 = vshll.u32 %v854_v20, 16  ;;  %v3272_v46 = vld [vmem:[%s4661_s3 + $0x158] sm:$0xff] }
  0xee   : > { %v979_v26 = vshrl.u32 %v856_v32, 16  ;;  %v731_v34 = vsel %vm667_vm4, %v635_v35, %v699_v39  ;;  %v962_v16 = vrot.slane %v960_v3, 1  ;;  %v1141_v30 = vrot.slane %v960_v3, 5  ;;  %2213 = vmatpush.bf16.msra.mxu0 %v4039_v49  ;;  %1989 = vmatpush.bf16.msra.mxu3 %v3272_v46 }
  0xef   : > { %v981_v7 = vshll.u32 %v856_v32, 16  ;;  %v754_v37 = vpack.c.bf16 %v3779_v5, %v731_v34  ;;  %v976_v20 = vrot.slane %v974_v1, 1  ;;  %v1143_v12 = vrot.slane %v974_v1, 5 }
  0xf0   : > { %v969_v2 = vrot.slane %v967_v56, 1  ;;  %v963_v29 = vor.u32 %v962_v16, %v958_v33  ;;  %v1142_v13 = vrot.slane %v967_v56, 5  ;;  %v4046_v3 = vunpack.c.l.b16 %v753_v25 }
  0xf1   : > { %v983_v22 = vrot.slane %v981_v7, 1  ;;  %v1144_v35 = vrot.slane %v981_v7, 5  ;;  %v977_v39 = vor.u32 %v976_v20, %v972_v48  ;;  %v4048_v28 = vunpack.c.l.b16 %v754_v37 }
  0xf2   : > { %v970_v32 = vor.u32 %v969_v2, %v965_v18  ;;  %v1208_v5 = vsel %vm3773_vm11, %v963_v29, %v1141_v30  ;;  %v4052_v1 = vunpack.c.h.b16 %v753_v25  ;;  %v4054_v43 = vunpack.c.h.b16 %v754_v37 }
  0xf3   : > { %v984_v34 = vor.u32 %v983_v22, %v979_v26  ;;  %v1210_v33 = vsel %vm3773_vm11, %v977_v39, %v1143_v12  ;;  %v4058_v56 = vunpack.c.l.b16 %v1208_v5  ;;  %v857_v48 = vpack.c.b16 %v4046_v3, %v4046_v3 }
  0xf4   : > { %v1209_v2 = vsel %vm3773_vm11, %v970_v32, %v1142_v13  ;;  %v4064_v18 = vunpack.c.l.b16 %v1210_v33  ;;  %v859_v25 = vpack.c.b16 %v4048_v28, %v4048_v28  ;;  %v1558_v16 = vpack.c.b16 %v4048_v28, %v4046_v3 }
  0xf5   : > { %v1211_v22 = vsel %vm3773_vm11, %v984_v34, %v1144_v35  ;;  %v4068_v29 = vunpack.c.l.b16 %v1209_v2  ;;  %v858_v13 = vpack.c.b16 %v4052_v1, %v4052_v1  ;;  %v860_v30 = vpack.c.b16 %v4054_v43, %v4054_v43 }
  0xf6   : > { %4728 = vst [vmem:[#allocation29_spill] sm:$0xff] %v4064_v18  ;;  %v4072_v26 = vunpack.c.l.b16 %v1211_v22  ;;  %v1330_v7 = vpack.c.b16 %v4064_v18, %v4058_v56  ;;  %v1559_v46 = vpack.c.b16 %v4054_v43, %v4052_v1  ;;  %v986_v37 = vshrl.u32 %v857_v48, 16 }
  0xf7   : > { %v988_v20 = vshll.u32 %v857_v48, 16  ;;  %v1000_v35 = vshrl.u32 %v859_v25, 16  ;;  %v1002_v39 = vshll.u32 %v859_v25, 16  ;;  %v993_v32 = vshrl.u32 %v858_v13, 16 }
  0xf8   : > { %4729 = vst [vmem:[#allocation30_spill] sm:$0xff] %v4072_v26  ;;  %v1331_v12 = vpack.c.b16 %v4072_v26, %v4068_v29  ;;  %1475 = vmatmul.bf16.gmra.mxu2 %v1330_v7  ;;  %v995_v33 = vshll.u32 %v858_v13, 16  ;;  %v1007_v2 = vshrl.u32 %v860_v30, 16  ;;  %v1009_v58 = vshll.u32 %v860_v30, 16 }
  0xf9   : > { %v990_v5 = vrot.slane %v988_v20, 1  ;;  %v1145_v34 = vrot.slane %v988_v20, 5  ;;  %v1004_v22 = vrot.slane %v1002_v39, 1  ;;  %v1147_v21 = vrot.slane %v1002_v39, 5 }
  0xfa   : > { %v997_v18 = vrot.slane %v995_v33, 1  ;;  %v1146_v48 = vrot.slane %v995_v33, 5  ;;  %v4090_v57 = vunpack.c.l.b16 %v3864_v27  ;;  %v1011_v25 = vrot.slane %v1009_v58, 1 }
  0xfb   : > { %v991_v24 = vor.u32 %v990_v5, %v986_v37  ;;  %v1005_v26 = vor.u32 %v1004_v22, %v1000_v35  ;;  %v1148_v40 = vrot.slane %v1009_v58, 5  ;;  %v861_v7 = vpack.c.b16 %v4087_v47, %v4087_v47  ;;  %v3263_v35 = vld [vmem:[%s4661_s3 + $0x110] sm:$0xff] }
  0xfc   : > { %1706 = vmatmul.bf16.gmra.mxu0 %v1558_v16  ;;  %v998_v30 = vor.u32 %v997_v18, %v993_v32  ;;  %v863_v37 = vpack.c.b16 %v4090_v57, %v4090_v57  ;;  %v4099_v20 = vunpack.c.h.b16 %v3805_v45  ;;  %v1012_v16 = vor.u32 %v1011_v25, %v1007_v2  ;;  %v3288_v18 = vld [vmem:[%s4661_s3 + $0x1d8] sm:$0xff]  ;;  %1941 = vmatpush.bf16.msra.mxu2 %v3263_v35 }
  0xfd   : > { %1524 = vmatmul.bf16.gmra.mxu3 %v1331_v12  ;;  %v1212_v13 = vsel %vm3773_vm11, %v991_v24, %v1145_v34  ;;  %1755 = vmatmul.bf16.gmra.mxu1 %v1559_v46  ;;  %v1214_v58 = vsel %vm3773_vm11, %v1005_v26, %v1147_v21  ;;  %v4116_v45 = vld [vmem:[%s4661_s3 + $0x198] sm:$0xff]  ;;  %v3271_v46 = vld [vmem:[%s4661_s3 + $0x150] sm:$0xff]  ;;  %v4126_v39 = vunpack.c.h.b16 %v3864_v27  ;;  %v1014_v33 = vshrl.u32 %v861_v7, 16 }
  0xfe   : > { %v4106_v12 = vunpack.c.l.b16 %v1212_v13  ;;  %v4121_v21 = vunpack.c.l.b16 %v1214_v58  ;;  %v1213_v26 = vsel %vm3773_vm11, %v998_v30, %v1146_v48  ;;  %v862_v32 = vpack.c.b16 %v4099_v20, %v4099_v20  ;;  %2263 = vmatpush.bf16.msra.mxu1 %v3288_v18  ;;  %2214 = vmatpush.bf16.msra.mxu0 %v4116_v45 }
  0xff   : > { %v1215_v5 = vsel %vm3773_vm11, %v1012_v16, %v1148_v40  ;;  %v4132_v34 = vunpack.c.l.b16 %v1213_v26  ;;  %v1016_v2 = vshll.u32 %v861_v7, 16  ;;  %v864_v27 = vpack.c.b16 %v4126_v39, %v4126_v39  ;;  %1990 = vmatpush.bf16.msra.mxu3 %v3271_v46 }
 0x100   : > { %v1332_v22 = vpack.c.b16 %v4121_v21, %v4106_v12  ;;  %v4137_v48 = vunpack.c.l.b16 %v1215_v5  ;;  %v1561_v25 = vpack.c.b16 %v4126_v39, %v4099_v20  ;;  %v1028_v13 = vshrl.u32 %v863_v37, 16 }
 0x101   : > { %v1018_v40 = vrot.slane %v1016_v2, 1  ;;  %v1030_v30 = vshll.u32 %v863_v37, 16  ;;  %v1149_v35 = vrot.slane %v1016_v2, 5  ;;  %v1021_v58 = vshrl.u32 %v862_v32, 16 }
 0x102   : > { %v1333_v7 = vpack.c.b16 %v4137_v48, %v4132_v34  ;;  %v1023_v16 = vshll.u32 %v862_v32, 16  ;;  %v1035_v18 = vshrl.u32 %v864_v27, 16  ;;  %v1037_v0 = vshll.u32 %v864_v27, 16 }
 0x103   : > { %v1019_v26 = vor.u32 %v1018_v40, %v1014_v33  ;;  %v1032_v5 = vrot.slane %v1030_v30, 1  ;;  %v1151_v24 = vrot.slane %v1030_v30, 5  ;;  %v4146_v9 = vunpack.c.l.b16 %v3880_v10 }
 0x104   : > { %v1025_v4 = vrot.slane %v1023_v16, 1  ;;  %v1150_v31 = vrot.slane %v1023_v16, 5  ;;  %v4149_v46 = vunpack.c.l.b16 %v3930_v14  ;;  %v1039_v51 = vrot.slane %v1037_v0, 1 }
 0x105   : > { %v1033_v37 = vor.u32 %v1032_v5, %v1028_v13  ;;  %v1216_v2 = vsel %vm3773_vm11, %v1019_v26, %v1149_v35  ;;  %v1152_v8 = vrot.slane %v1037_v0, 5  ;;  %v865_v27 = vpack.c.b16 %v4146_v9, %v4146_v9  ;;  %v3262_v13 = vld [vmem:[%s4661_s3 + $0x108] sm:$0xff] }
 0x106   : > { %v4153_v32 = vunpack.c.l.b16 %v1216_v2  ;;  %v1026_v33 = vor.u32 %v1025_v4, %v1021_v58  ;;  %v867_v40 = vpack.c.b16 %v4149_v46, %v4149_v46  ;;  %v1040_v16 = vor.u32 %v1039_v51, %v1035_v18  ;;  %1942 = vmatpush.bf16.msra.mxu2 %v3262_v13  ;;  %v3286_v13 = vld [vmem:[%s4661_s3 + $0x1c8] sm:$0xff] }
 0x107   : > { %v1218_v30 = vsel %vm3773_vm11, %v1033_v37, %v1151_v24  ;;  %v4164_v35 = vunpack.c.h.b16 %v3880_v10  ;;  %v4171_v58 = vunpack.c.h.b16 %v3930_v14  ;;  %v1042_v26 = vshrl.u32 %v865_v27, 16 }
 0x108   : > { %1480 = vmatmul.bf16.gmra.mxu2 %v1332_v22  ;;  %v4166_v0 = vunpack.c.l.b16 %v1218_v30  ;;  %v1217_v4 = vsel %vm3773_vm11, %v1026_v33, %v1150_v31  ;;  %v1219_v24 = vsel %vm3773_vm11, %v1040_v16, %v1152_v8  ;;  %v1044_v10 = vshll.u32 %v865_v27, 16 }
 0x109   : > { %v4175_v51 = vunpack.c.l.b16 %v1217_v4  ;;  %v866_v18 = vpack.c.b16 %v4164_v35, %v4164_v35  ;;  %v4181_v5 = vunpack.c.l.b16 %v1219_v24  ;;  %v868_v31 = vpack.c.b16 %v4171_v58, %v4171_v58 }
 0x10a   : > { %v1046_v37 = vrot.slane %v1044_v10, 1  ;;  %v1056_v2 = vshrl.u32 %v867_v40, 16  ;;  %v1058_v8 = vshll.u32 %v867_v40, 16  ;;  %v1153_v33 = vrot.slane %v1044_v10, 5 }
 0x10b   : > { %v4730_v30 = vpack.c.b16 %v4090_v57, %v4087_v47  ;;  %v1049_v16 = vshrl.u32 %v866_v18, 16  ;;  %v1051_v4 = vshll.u32 %v866_v18, 16  ;;  %v1063_v24 = vshrl.u32 %v868_v31, 16  ;;  %v3270_v18 = vld [vmem:[%s4661_s3 + $0x148] sm:$0xff] }
 0x10c   : > { %v1047_v14 = vor.u32 %v1046_v37, %v1042_v26  ;;  %v1060_v22 = vrot.slane %v1058_v8, 1  ;;  %v1155_v40 = vrot.slane %v1058_v8, 5  ;;  %v1065_v10 = vshll.u32 %v868_v31, 16  ;;  %1991 = vmatpush.bf16.msra.mxu3 %v3270_v18 }
 0x10d   : > { %1529 = vmatmul.bf16.gmra.mxu3 %v1333_v7  ;;  %1711 = vmatmul.bf16.gmra.mxu0 %v4730_v30  ;;  %v3287_v7 = vld [vmem:[%s4661_s3 + $0x1d0] sm:$0xff]  ;;  %v1053_v27 = vrot.slane %v1051_v4, 1  ;;  %v1154_v55 = vrot.slane %v1051_v4, 5  ;;  %v4210_v26 = vunpack.c.h.b16 %v3976_v23  ;;  %v4218_v4 = vld [vmem:[%s4661_s3 + $0x188] sm:$0xff]  ;;  %v869_v44 = vpack.c.b16 %v3982_v6, %v3982_v6 }
 0x10e   : > { %1760 = vmatmul.bf16.gmra.mxu1 %v1561_v25  ;;  %v4201_v30 = vld [vmem:[%s4661_s3 + $0x190] sm:$0xff]  ;;  %v4207_v25 = vunpack.c.l.b16 %v4008_v61  ;;  %v1061_v31 = vor.u32 %v1060_v22, %v1056_v2  ;;  %v1220_v37 = vsel %vm3773_vm11, %v1047_v14, %v1153_v33  ;;  %v1067_v8 = vrot.slane %v1065_v10, 1 }
 0x10f   : > { %4731 = vst [vmem:[#allocation31_spill] sm:$0xff] %v4210_v26  ;;  %v1156_v59 = vrot.slane %v1065_v10, 5  ;;  %2264 = vmatpush.bf16.msra.mxu1 %v3287_v7  ;;  %2215 = vmatpush.bf16.msra.mxu0 %v4201_v30  ;;  %v4223_v23 = vunpack.c.l.b16 %v1220_v37  ;;  %v1054_v22 = vor.u32 %v1053_v27, %v1049_v16  ;;  %v4228_v2 = vunpack.c.h.b16 %v4008_v61 }
 0x110   : > { %v1222_v33 = vsel %vm3773_vm11, %v1061_v31, %v1155_v40  ;;  %v1068_v10 = vor.u32 %v1067_v8, %v1063_v24  ;;  %v870_v7 = vpack.c.b16 %v4210_v26, %v4210_v26  ;;  %v871_v18 = vpack.c.b16 %v4207_v25, %v4207_v25 }
 0x111   : > { %4732 = vst [vmem:[#allocation32_spill] sm:$0xff] %v4223_v23  ;;  %v4236_v37 = vunpack.c.l.b16 %v1222_v33  ;;  %v1221_v27 = vsel %vm3773_vm11, %v1054_v22, %v1154_v55  ;;  %v872_v61 = vpack.c.b16 %v4228_v2, %v4228_v2  ;;  %v1565_v16 = vpack.c.b16 %v4228_v2, %v4210_v26 }
 0x112   : > { %v1223_v24 = vsel %vm3773_vm11, %v1068_v10, %v1156_v59  ;;  %v4246_v40 = vunpack.c.l.b16 %v1221_v27  ;;  %v1070_v31 = vshrl.u32 %v869_v44, 16  ;;  %v1072_v22 = vshll.u32 %v869_v44, 16 }
 0x113   : > { %4733 = vst [vmem:[#allocation33_spill] sm:$0xff] %v4236_v37  ;;  %2216 = vmatpush.bf16.msra.mxu0 %v4218_v4  ;;  %2265 = vmatpush.bf16.msra.mxu1 %v3286_v13  ;;  %v1336_v55 = vpack.c.b16 %v4236_v37, %v4223_v23  ;;  %v4253_v8 = vunpack.c.l.b16 %v1223_v24  ;;  %v1077_v33 = vshrl.u32 %v870_v7, 16  ;;  %v1084_v14 = vshrl.u32 %v871_v18, 16 }
 0x114   : > { %v1086_v60 = vshll.u32 %v871_v18, 16  ;;  %v1079_v62 = vshll.u32 %v870_v7, 16  ;;  %v1091_v59 = vshrl.u32 %v872_v61, 16  ;;  %v1074_v27 = vrot.slane %v1072_v22, 1 }
 0x115   : > { %4734 = vst [vmem:[#allocation34_spill] sm:$0xff] %v4253_v8  ;;  %v1337_v10 = vpack.c.b16 %v4253_v8, %v4246_v40  ;;  %v1157_v13 = vrot.slane %v1072_v22, 5  ;;  %v1093_v19 = vshll.u32 %v872_v61, 16  ;;  %v4735_v24 = vpack.c.b16 %v4166_v0, %v4153_v32 }
 0x116   : > { %v1088_v26 = vrot.slane %v1086_v60, 1  ;;  %v1159_v53 = vrot.slane %v1086_v60, 5  ;;  %v1081_v54 = vrot.slane %v1079_v62, 1  ;;  %v1158_v50 = vrot.slane %v1079_v62, 5 }
 0x117   : > { %v1075_v44 = vor.u32 %v1074_v27, %v1070_v31  ;;  %v1095_v37 = vrot.slane %v1093_v19, 1  ;;  %v1160_v23 = vrot.slane %v1093_v19, 5  ;;  %v4736_v62 = vpack.c.b16 %v4181_v5, %v4175_v51 }
 0x118   : > { %1485 = vmatmul.bf16.gmra.mxu2 %v4735_v24  ;;  %v1089_v18 = vor.u32 %v1088_v26, %v1084_v14  ;;  %v1082_v7 = vor.u32 %v1081_v54, %v1077_v33  ;;  %v4737_v31 = vpack.c.b16 %v4149_v46, %v4146_v9  ;;  %v3285_v14 = vld [vmem:[%s4661_s3 + $0x1c0] sm:$0xff]  ;;  %v2087_v27 = vpack.c.b16 %v4068_v29, %v4001_v52 }
 0x119   : > { %v1224_v36 = vsel %vm3773_vm11, %v1075_v44, %v1157_v13  ;;  %v1096_v8 = vor.u32 %v1095_v37, %v1091_v59  ;;  %2266 = vmatpush.bf16.msra.mxu1 %v3285_v14  ;;  %v2086_v59 = vpack.c.b16 %v4058_v56, %v3990_v41  ;;  %v4741_v44 = vld [vmem:[#allocation17_spill] sm:$0xff]  ;;  %v4761_v29 = vld [vmem:[#allocation19_spill] sm:$0xff]  ;;  %v4768_v41 = vld [vmem:[#allocation30_spill] sm:$0xff]  ;;  %vm2470_vm5 = vcmask 1040384  }
 0x11a   : > { %v1226_v61 = vsel %vm3773_vm11, %v1089_v18, %v1159_v53  ;;  %v1225_v60 = vsel %vm3773_vm11, %v1082_v7, %v1158_v50  ;;  %v4272_v19 = vunpack.c.l.b16 %v1224_v36  ;;  %v3261_v53 = vld [vmem:[%s4661_s3 + $0x100] sm:$0xff]  ;;  %v4738_v36 = vpack.c.b16 %v4171_v58, %v4164_v35  ;;  %v4752_v13 = vld [vmem:[#allocation13_spill] sm:$0xff] }
 0x11b   : > { %v4274_v54 = vunpack.c.l.b16 %v1226_v61  ;;  %v1227_v26 = vsel %vm3773_vm11, %v1096_v8, %v1160_v23  ;;  %v3277_v50 = vld [vmem:[%s4661_s3 + $0x180] sm:$0xff]  ;;  %v4290_v37 = vunpack.c.l.b16 %v1225_v60  ;;  %1943 = vmatpush.bf16.msra.mxu2 %v3261_v53 }
 0x11c   : > { %v4292_v63 = vunpack.c.l.b16 %v1227_v26  ;;  %v3269_v23 = vld [vmem:[%s4661_s3 + $0x140] sm:$0xff]  ;;  %2217 = vmatpush.bf16.msra.mxu0 %v3277_v50 }
 0x11d   : > { %1534 = vmatmul.bf16.gmra.mxu3 %v4736_v62  ;;  %1716 = vmatmul.bf16.gmra.mxu0 %v4737_v31  ;;  %v1338_v8 = vpack.c.b16 %v4274_v54, %v4272_v19  ;;  %v4742_v18 = vld [vmem:[#allocation11_spill] sm:$0xff] }
 0x11e   : > { %1765 = vmatmul.bf16.gmra.mxu1 %v4738_v36  ;;  %v1339_v33 = vpack.c.b16 %v4292_v63, %v4290_v37  ;;  %1992 = vmatpush.bf16.msra.mxu3 %v3269_v23  ;;  %v4743_v7 = vpack.c.b16 %v4741_v44, %v4742_v18  ;;  %v4750_v18 = vld [vmem:[#allocation20_spill] sm:$0xff] }
 0x11f   : > { %3387 = vmatpush.bf16.msrb.mxu2 %v3848_v11  ;;  %v4739_v11 = vpack.c.b16 %v4207_v25, %v3982_v6 }
 0x123   : > { %3388 = vmatpush.bf16.msrb.mxu2 %v3904_v38  ;;  %v4769_v38 = vld [vmem:[#allocation10_spill] sm:$0xff] }
 0x127   : > { %3389 = vmatpush.bf16.msrb.mxu2 %v3971_v17  ;;  %v4753_v17 = vld [vmem:[#allocation8_spill] sm:$0xff] }
 0x128   : > { %1490 = vmatmul.bf16.gmra.mxu2 %v1336_v55  ;;  %v2089_v55 = vpack.c.b16 %v4769_v38, %v4768_v41  ;;  %v4772_v38 = vld [vmem:[#allocation28_spill] sm:$0xff]  ;;  %v4773_v41 = vld [vmem:[#allocation6_spill] sm:$0xff] }
 0x12b   : > { %3390 = vmatpush.bf16.msrb.mxu2 %v4039_v49 }
 0x12d   : > { %1539 = vmatmul.bf16.gmra.mxu3 %v1337_v10  ;;  %1721 = vmatmul.bf16.gmra.mxu0 %v4739_v11  ;;  %v4748_v11 = vld [vmem:[#allocation16_spill] sm:$0xff] }
 0x12e   : > { %1770 = vmatmul.bf16.gmra.mxu1 %v1565_v16 }
 0x12f   : > { %3391 = vmatpush.bf16.msrb.mxu2 %v4116_v45 }
 0x133   : > { %v1687_v52 = vpop.f32.mrf.mxu0  ;;  %3392 = vmatpush.bf16.msrb.mxu2 %v4201_v30  ;;  %v4740_v30 = vpack.c.b16 %v3884_v15, %v3799_v42  ;;  %v4745_v42 = vld [vmem:[#allocation7_spill] sm:$0xff]  ;;  %v4746_v15 = vld [vmem:[#allocation12_spill] sm:$0xff] }
 0x134   : > { %v1808_v14 = vpack.c.b16 %v4746_v15, %v4745_v42  ;;  %v4754_v42 = vpack.c.b16 %v4752_v13, %v4753_v17 }
 0x135   : > { %v4325_v56 = vpop.f32.mrf.mxu1 }
 0x137   : > { %3393 = vmatpush.bf16.msrb.mxu2 %v4218_v4  ;;  %v4744_v4 = vld [vmem:[#allocation32_spill] sm:$0xff] }
 0x138   : > { %1495 = vmatmul.bf16.gmra.mxu2 %v1338_v8 }
 0x13b   : > { %v1689_v16 = vpop.f32.mrf.mxu0  ;;  %3394 = vmatpush.bf16.msrb.mxu2 %v3277_v50  ;;  %v4747_v50 = vld [vmem:[#allocation31_spill] sm:$0xff] }
 0x13d   : > { %1544 = vmatmul.bf16.gmra.mxu3 %v1339_v33  ;;  %2218 = vmatmul.bf16.vlgmr.msra.gmra.mxu0 %v4740_v30  ;;  %v4340_v10 = vpop.f32.mrf.mxu1  ;;  %v4749_v30 = vld [vmem:[#allocation23_spill] sm:$0xff] }
 0x13e   : > { %2267 = vmatmul.bf16.vlgmr.msra.gmra.mxu1 %v4743_v7  ;;  %v2084_v44 = vpack.c.b16 %v4749_v30, %v4748_v11  ;;  %v4751_v7 = vld [vmem:[#allocation24_spill] sm:$0xff] }
 0x13f   : > { %v2085_v22 = vpack.c.b16 %v4751_v7, %v4750_v18  ;;  %v4757_v18 = vld [vmem:[#allocation14_spill] sm:$0xff] }
 0x140   : > { %v4758_v7 = vld [vmem:[#allocation18_spill] sm:$0xff] }
 0x141   : > { %v1810_v23 = vpack.c.b16 %v4758_v7, %v4757_v18 }
 0x143   : > { %v1692_v62 = vpop.f32.mrf.mxu0 }
 0x144   : > { %v1461_v31 = vpop.f32.mrf.mxu2 }
 0x145   : > { %v4349_v26 = vpop.f32.mrf.mxu1 }
 0x146   : > { %v1510_v53 = vpop.f32.mrf.mxu3 }
 0x147   : > { %v1511_v36 = vadd.f32 %v1510_v53, %v1461_v31 }
 0x148   : > { %1944 = vmatmul.bf16.vlgmr.msra.gmra.mxu2 %v1808_v14 }
 0x149   : > { %v4357_v33 = vadd.f32 %v1687_v52, %v1511_v36  ;;  %v4755_v52 = vld [vmem:[#allocation33_spill] sm:$0xff]  ;;  %v4756_v36 = vld [vmem:[#allocation34_spill] sm:$0xff] }
 0x14b   : > { %v1694_v31 = vpop.f32.mrf.mxu0 }
 0x14c   : > { %v1463_v24 = vpop.f32.mrf.mxu2 }
 0x14d   : > { %1993 = vmatmul.bf16.vlgmr.msra.gmra.mxu3 %v4754_v42  ;;  %2223 = vmatmul.bf16.gmra.mxu0 %v2084_v44  ;;  %v4366_v8 = vpop.f32.mrf.mxu1 }
 0x14e   : > { %2272 = vmatmul.bf16.gmra.mxu1 %v2085_v22  ;;  %v1512_v53 = vpop.f32.mrf.mxu3  ;;  %v4759_v22 = vld [vmem:[#allocation15_spill] sm:$0xff] }
 0x14f   : > { %v1513_v15 = vadd.f32 %v1512_v53, %v1463_v24  ;;  %v4760_v24 = vld [vmem:[#allocation21_spill] sm:$0xff] }
 0x150   : > { %v1811_v42 = vpack.c.b16 %v4760_v24, %v4759_v22  ;;  %v4763_v24 = vld [vmem:[#allocation22_spill] sm:$0xff] }
 0x151   : > { %v4372_v30 = vadd.f32 %v1689_v16, %v1513_v15 }
 0x156   : > { %v1697_v13 = vpop.f32.mrf.mxu0  ;;  %v1466_v17 = vpop.f32.mrf.mxu2 }
 0x158   : > { %1949 = vmatmul.bf16.gmra.mxu2 %v1810_v23  ;;  %v4762_v23 = vld [vmem:[#allocation25_spill] sm:$0xff] }
 0x159   : > { %v4376_v44 = vpop.f32.mrf.mxu1  ;;  %v1812_v60 = vpack.c.b16 %v4762_v23, %v4761_v29  ;;  %v4770_v23 = vld [vmem:[#allocation26_spill] sm:$0xff] }
 0x15d   : > { %1998 = vmatmul.bf16.gmra.mxu3 %v1811_v42  ;;  %2228 = vmatmul.bf16.gmra.mxu0 %v2086_v59  ;;  %v1515_v53 = vpop.f32.mrf.mxu3  ;;  %v4764_v59 = vld [vmem:[#allocation27_spill] sm:$0xff] }
 0x15e   : > { %2277 = vmatmul.bf16.gmra.mxu1 %v2087_v27  ;;  %v1516_v14 = vadd.f32 %v1515_v53, %v1466_v17  ;;  %v1699_v49 = vpop.f32.mrf.mxu0  ;;  %v1468_v15 = vpop.f32.mrf.mxu2  ;;  %v1813_v42 = vpack.c.b16 %v4764_v59, %v4763_v24  ;;  %v4766_v17 = vld [vmem:[#allocation29_spill] sm:$0xff] }
 0x15f   : > { %v4771_v24 = vld [vmem:[#allocation5_spill] sm:$0xff] }
 0x160   : > { %v4380_v11 = vadd.f32 %v1692_v62, %v1516_v14  ;;  %v4767_v62 = vld [vmem:[#allocation9_spill] sm:$0xff]  ;;  %v1814_v59 = vpack.c.b16 %v4771_v24, %v4770_v23 }
 0x161   : > { %v4382_v16 = vpop.f32.mrf.mxu1  ;;  %v2088_v14 = vpack.c.b16 %v4767_v62, %v4766_v17 }
 0x165   : > { %v1517_v18 = vpop.f32.mrf.mxu3 }
 0x166   : > { %v1518_v7 = vadd.f32 %v1517_v18, %v1468_v15 }
 0x168   : > { %v4386_v61 = vadd.f32 %v1694_v31, %v1518_v7  ;;  %1954 = vmatmul.bf16.gmra.mxu2 %v1812_v60 }
 0x169   : > { %v1702_v22 = vpop.f32.mrf.mxu0 }
 0x16a   : > { %v4390_v27 = vpop.f32.mrf.mxu1 }
 0x16b   : > { %4765 = vst [vmem:[#allocation17_spill] sm:$0xff] %v4390_v27  ;;  %v1471_v53 = vpop.f32.mrf.mxu2 }
 0x16d   : > { %2003 = vmatmul.bf16.gmra.mxu3 %v1813_v42  ;;  %2233 = vmatmul.bf16.gmra.mxu0 %v2088_v14 }
 0x16e   : > { %2282 = vmatmul.bf16.gmra.mxu1 %v2089_v55  ;;  %v1815_v55 = vpack.c.b16 %v4773_v41, %v4772_v38  ;;  %v4779_v41 = vpack.c.b16 %v4246_v40, %v4181_v5  ;;  %v4781_v40 = vpack.c.b16 %v4164_v35, %v4126_v39  ;;  %v4784_v39 = vpack.c.b16 %v3982_v6, %v4149_v46 }
 0x170   : > { %v1520_v29 = vpop.f32.mrf.mxu3 }
 0x171   : > { %v1521_v31 = vadd.f32 %v1520_v29, %v1471_v53  ;;  %v1704_v15 = vpop.f32.mrf.mxu0  ;;  %v4775_v53 = vpack.c.b16 %v4175_v51, %v4137_v48  ;;  %v4777_v51 = vpack.c.b16 %v4099_v20, %v4054_v43  ;;  %v4780_v43 = vpack.c.b16 %v4146_v9, %v4090_v57 }
 0x172   : > { %v4398_v18 = vpop.f32.mrf.mxu1 }
 0x173   : > { %v4396_v60 = vadd.f32 %v1697_v13, %v1521_v31  ;;  %v1473_v7 = vpop.f32.mrf.mxu2  ;;  %v4774_v13 = vpack.c.b16 %v4153_v32, %v4121_v21 }
 0x178   : > { %v1522_v45 = vpop.f32.mrf.mxu3  ;;  %1959 = vmatmul.bf16.gmra.mxu2 %v1814_v59 }
 0x179   : > { %v1523_v17 = vadd.f32 %v1522_v45, %v1473_v7  ;;  %v1707_v62 = vpop.f32.mrf.mxu0 }
 0x17a   : > { %v4406_v42 = vpop.f32.mrf.mxu1 }
 0x17b   : > { %v4402_v27 = vadd.f32 %v1699_v49, %v1523_v17  ;;  %v1476_v14 = vpop.f32.mrf.mxu2  ;;  %v4776_v17 = vpack.c.b16 %v4087_v47, %v4048_v28 }
 0x17d   : > { %2008 = vmatmul.bf16.gmra.mxu3 %v1815_v55  ;;  %2238 = vmatmul.bf16.gmra.mxu0 %v4774_v13 }
 0x17e   : > { %2287 = vmatmul.bf16.gmra.mxu1 %v4775_v53 }
 0x180   : > { %v1525_v45 = vpop.f32.mrf.mxu3 }
 0x181   : > { %v1526_v29 = vadd.f32 %v1525_v45, %v1476_v14  ;;  %v1709_v31 = vpop.f32.mrf.mxu0 }
 0x182   : > { %v4416_v7 = vpop.f32.mrf.mxu1 }
 0x183   : > { %v4414_v49 = vadd.f32 %v1702_v22, %v1526_v29  ;;  %v1478_v23 = vpop.f32.mrf.mxu2  ;;  %v4778_v22 = vpack.c.b16 %v4744_v4, %v4166_v0  ;;  %v4783_v29 = vpack.c.b16 %v4290_v37, %v4756_v36  ;;  %v4785_v36 = vpack.c.b16 %v4747_v50, %v4171_v58 }
 0x188   : > { %v1527_v24 = vpop.f32.mrf.mxu3  ;;  %1964 = vmatmul.bf16.gmra.mxu2 %v4776_v17 }
 0x189   : > { %v1528_v59 = vadd.f32 %v1527_v24, %v1478_v23 }
 0x18a   : > { %v1712_v21 = vpop.f32.mrf.mxu0 }
 0x18b   : > { %v4421_v32 = vadd.f32 %v1704_v15, %v1528_v59  ;;  %v4423_v38 = vpop.f32.mrf.mxu1  ;;  %v1481_v48 = vpop.f32.mrf.mxu2 }
 0x18d   : > { %2013 = vmatmul.bf16.gmra.mxu3 %v4777_v51  ;;  %2243 = vmatmul.bf16.gmra.mxu0 %v4778_v22 }
 0x18e   : > { %2292 = vmatmul.bf16.gmra.mxu1 %v4779_v41 }
 0x190   : > { %v1530_v47 = vpop.f32.mrf.mxu3 }
 0x191   : > { %v1531_v28 = vadd.f32 %v1530_v47, %v1481_v48 }
 0x192   : > { %v1714_v55 = vpop.f32.mrf.mxu0 }
 0x193   : > { %v4434_v15 = vadd.f32 %v1707_v62, %v1531_v28  ;;  %v4436_v14 = vpop.f32.mrf.mxu1  ;;  %v1483_v13 = vpop.f32.mrf.mxu2  ;;  %v4782_v62 = vpack.c.b16 %v4272_v19, %v4755_v52 }
 0x198   : > { %v1532_v53 = vpop.f32.mrf.mxu3  ;;  %1969 = vmatmul.bf16.gmra.mxu2 %v4780_v43 }
 0x199   : > { %v1533_v45 = vadd.f32 %v1532_v53, %v1483_v13  ;;  %v4787_v13 = vpack.c.b16 %v4046_v3, %v4207_v25  ;;  %v4789_v3 = vpack.c.b16 %v4106_v12, %v4274_v54  ;;  %v4495_v12 = vld [vmem:[%s4662_s4] ss:$0 sm:$0xff] }
 0x19a   : > { %v1717_v20 = vpop.f32.mrf.mxu0 }
 0x19b   : > { %v4441_v0 = vadd.f32 %v1709_v31, %v1533_v45  ;;  %v4443_v4 = vpop.f32.mrf.mxu1  ;;  %v1486_v5 = vpop.f32.mrf.mxu2 }
 0x19d   : > { %2018 = vmatmul.bf16.gmra.mxu3 %v4781_v40  ;;  %2248 = vmatmul.bf16.gmra.mxu0 %v4782_v62 }
 0x19e   : > { %2297 = vmatmul.bf16.gmra.mxu1 %v4783_v29 }
 0x1a0   : > { %v1535_v9 = vpop.f32.mrf.mxu3 }
 0x1a1   : > { %v1536_v57 = vadd.f32 %v1535_v9, %v1486_v5 }
 0x1a2   : > { %v1719_v23 = vpop.f32.mrf.mxu0 }
 0x1a3   : > { %v4454_v31 = vadd.f32 %v1712_v21, %v1536_v57  ;;  %v4456_v24 = vpop.f32.mrf.mxu1  ;;  %v1488_v59 = vpop.f32.mrf.mxu2  ;;  %v4786_v21 = vpack.c.b16 %v4132_v34, %v4292_v63  ;;  %v4788_v63 = vpack.c.b16 %v4052_v1, %v4228_v2  ;;  %v1737_v2 = vadd.f32 %v4325_v56, %v4357_v33 }
 0x1a8   : > { %v1537_v17 = vpop.f32.mrf.mxu3  ;;  %1974 = vmatmul.bf16.gmra.mxu2 %v4784_v39 }
 0x1a9   : > { %v1538_v48 = vadd.f32 %v1537_v17, %v1488_v59 }
 0x1aa   : > { %v1722_v35 = vpop.f32.mrf.mxu0 }
 0x1ab   : > { %v4461_v19 = vadd.f32 %v1714_v55, %v1538_v48  ;;  %v4463_v52 = vpop.f32.mrf.mxu1  ;;  %v1491_v37 = vpop.f32.mrf.mxu2 }
 0x1ad   : > { %2023 = vmatmul.bf16.gmra.mxu3 %v4785_v36 }
 0x1ae   : > { %2302 = vmatmul.bf16.gmra.mxu1 %v4786_v21 }
 0x1b0   : > { %v1540_v51 = vpop.f32.mrf.mxu3 }
 0x1b1   : > { %v1541_v22 = vadd.f32 %v1540_v51, %v1491_v37 }
 0x1b2   : > { %v1724_v41 = vpop.f32.mrf.mxu0 }
 0x1b3   : > { %v4471_v47 = vadd.f32 %v1717_v20, %v1541_v22  ;;  %v4473_v6 = vpop.f32.mrf.mxu1  ;;  %v1493_v46 = vpop.f32.mrf.mxu2 }
 0x1b8   : > { %v1542_v28 = vpop.f32.mrf.mxu3  ;;  %1979 = vmatmul.bf16.gmra.mxu2 %v4787_v13 }
 0x1b9   : > { %v1543_v55 = vadd.f32 %v1542_v28, %v1493_v46 }
 0x1ba   : > { %v2219_v58 = vpop.f32.mrf.mxu0 }
 0x1bb   : > { %v4478_v50 = vadd.f32 %v1719_v23, %v1543_v55  ;;  %v2268_v53 = vpop.f32.mrf.mxu1  ;;  %v1496_v34 = vpop.f32.mrf.mxu2 }
 0x1bc   : > { %v2269_v21 = vadd.f32 %v2268_v53, %v2219_v58 }
 0x1bd   : > { %2028 = vmatmul.bf16.gmra.mxu3 %v4788_v63 }
 0x1c0   : > { %v1545_v45 = vpop.f32.mrf.mxu3 }
 0x1c1   : > { %v1546_v43 = vadd.f32 %v1545_v45, %v1496_v34 }
 0x1c2   : > { %v2221_v20 = vpop.f32.mrf.mxu0 }
 0x1c3   : > { %v4483_v5 = vadd.f32 %v1722_v35, %v1546_v43  ;;  %v2270_v40 = vpop.f32.mrf.mxu1  ;;  %v1498_v62 = vpop.f32.mrf.mxu2  ;;  %v2381_v35 = vlaneseq }
 0x1c4   : > { %v2271_v33 = vadd.f32 %v2270_v40, %v2221_v20 }
 0x1c5   : > { %v4497_v54 = vshrl.u32 %v2381_v35, 7 }
 0x1c7   : > { %vm2386_vm11 = vcmp.lt.s32.totalorder %v4497_v54, 7 }
 0x1c8   : > { %v1547_v29 = vpop.f32.mrf.mxu3  ;;  %2253 = vmatmul.bf16.vlgmr.msrb.gmra.mxu2 %v4789_v3 }
 0x1c9   : > { %v1548_v9 = vadd.f32 %v1547_v29, %v1498_v62 }
 0x1ca   : > { %v2224_v25 = vpop.f32.mrf.mxu0 }
 0x1cb   : > { %v4488_v57 = vadd.f32 %v1724_v41, %v1548_v9  ;;  %v2273_v23 = vpop.f32.mrf.mxu1  ;;  %v1945_v59 = vpop.f32.mrf.mxu2  ;;  %v1739_v41 = vadd.f32 %v4340_v10, %v4372_v30  ;;  %v1742_v30 = vadd.f32 %v4349_v26, %v4380_v11  ;;  %v1744_v26 = vadd.f32 %v4366_v8, %v4386_v61 }
 0x1cc   : > { %v2274_v9 = vadd.f32 %v2273_v23, %v2224_v25 }
 0x1d0   : > { %v1994_v1 = vpop.f32.mrf.mxu3 }
 0x1d1   : > { %v1995_v17 = vadd.f32 %v1994_v1, %v1945_v59 }
 0x1d2   : > { %v2226_v39 = vpop.f32.mrf.mxu0 }
 0x1d3   : > { %v2034_v48 = vadd.f32 %v1995_v17, %v1737_v2  ;;  %v2275_v37 = vpop.f32.mrf.mxu1  ;;  %v1947_v36 = vpop.f32.mrf.mxu2 }
 0x1d4   : > { %v2276_v25 = vadd.f32 %v2275_v37, %v2226_v39 }
 0x1d5   : > { %v2308_v51 = vadd.f32 %v2269_v21, %v2034_v48 }
 0x1d7   : > { %v2328_v46 = vadd.f32 %v4495_v12, %v2308_v51 }
 0x1d8   : > { %v1996_v22 = vpop.f32.mrf.mxu3 }
 0x1d9   : > { %v1997_v56 = vadd.f32 %v1996_v22, %v1947_v36  ;;  %v2396_v34 = vsel %vm2386_vm11, %v2328_v46, 0.0 }
 0x1da   : > { %v2229_v58 = vpop.f32.mrf.mxu0  ;;  %v2433_v40 = vmul.f32 %v2396_v34, %v2396_v34 }
 0x1db   : > { %v2035_v28 = vadd.f32 %v1997_v56, %v1739_v41  ;;  %v1950_v55 = vpop.f32.mrf.mxu2  ;;  %v2278_v53 = vpop.f32.mrf.mxu1 }
 0x1dc   : > { %v2279_v39 = vadd.f32 %v2278_v53, %v2229_v58 }
 0x1dd   : > { %v2309_v13 = vadd.f32 %v2271_v33, %v2035_v28 }
 0x1df   : > { %v2329_v63 = vadd.f32 %v4495_v12, %v2309_v13 }
 0x1e0   : > { %v1999_v45 = vpop.f32.mrf.mxu3 }
 0x1e1   : > { %v3296_v43 = vpack.c.bf16 %v2329_v63, %v2328_v46  ;;  %v2397_v10 = vsel %vm2386_vm11, %v2329_v63, 0.0  ;;  %v2000_v20 = vadd.f32 %v1999_v45, %v1950_v55  ;;  %v1747_v63 = vadd.f32 %v4376_v44, %v4396_v60 }
 0x1e2   : > { %v2412_v62 = vadd.f32 %v2397_v10, %v2396_v34  ;;  %v2434_v29 = vmul.f32 %v2397_v10, %v2397_v10  ;;  %v2231_v48 = vpop.f32.mrf.mxu0 }
 0x1e3   : > { %3297 = vst [vmem:[#allocation2 + $0x30] sm:$0xff] %v3296_v43   ;;  %v2036_v3 = vadd.f32 %v2000_v20, %v1742_v30  ;;  %v1952_v1 = vpop.f32.mrf.mxu2  ;;  %v2280_v35 = vpop.f32.mrf.mxu1 }
 0x1e4   : > { %v2449_v59 = vadd.f32 %v2434_v29, %v2433_v40 }
 0x1e5   : > { %v2310_v2 = vadd.f32 %v2274_v9, %v2036_v3  ;;  %v1749_v9 = vadd.f32 %v4382_v16, %v4402_v27 }
 0x1e7   : > { %v2330_v17 = vadd.f32 %v4495_v12, %v2310_v2 }
 0x1e8   : > { %v2001_v36 = vpop.f32.mrf.mxu3 }
 0x1e9   : > { %v2398_v21 = vsel %vm2386_vm11, %v2330_v17, 0.0  ;;  %v2002_v11 = vadd.f32 %v2001_v36, %v1952_v1 }
 0x1ea   : > { %v2413_v51 = vadd.f32 %v2412_v62, %v2398_v21  ;;  %v2435_v22 = vmul.f32 %v2398_v21, %v2398_v21  ;;  %v2234_v34 = vpop.f32.mrf.mxu0 }
 0x1eb   : > { %v2037_v23 = vadd.f32 %v2002_v11, %v1744_v26  ;;  %v1955_v56 = vpop.f32.mrf.mxu2  ;;  %v2283_v43 = vpop.f32.mrf.mxu1 }
 0x1ec   : > { %v2450_v41 = vadd.f32 %v2449_v59, %v2435_v22  ;;  %v2281_v59 = vadd.f32 %v2280_v35, %v2231_v48  ;;  %v4790_v22 = vld [vmem:[#allocation17_spill] sm:$0xff]  ;;  %v2284_v48 = vadd.f32 %v2283_v43, %v2234_v34 }
 0x1ed   : > { %v2311_v33 = vadd.f32 %v2276_v25, %v2037_v23  ;;  %v1752_v16 = vadd.f32 %v4790_v22, %v4414_v49  ;;  %v1754_v49 = vadd.f32 %v4398_v18, %v4421_v32 }
 0x1ef   : > { %v2331_v46 = vadd.f32 %v4495_v12, %v2311_v33 }
 0x1f0   : > { %v2004_v28 = vpop.f32.mrf.mxu3 }
 0x1f1   : > { %v3301_v55 = vpack.c.bf16 %v2331_v46, %v2330_v17  ;;  %v2399_v13 = vsel %vm2386_vm11, %v2331_v46, 0.0  ;;  %v2005_v61 = vadd.f32 %v2004_v28, %v1955_v56 }
 0x1f2   : > { %v2414_v8 = vadd.f32 %v2413_v51, %v2399_v13  ;;  %v2436_v45 = vmul.f32 %v2399_v13, %v2399_v13  ;;  %v2236_v1 = vpop.f32.mrf.mxu0 }
 0x1f3   : > { %3365 = vst [vmem:[#allocation2] sm:$0xff] %v3301_v55   ;;  %v2038_v37 = vadd.f32 %v2005_v61, %v1747_v63  ;;  %v1957_v30 = vpop.f32.mrf.mxu2  ;;  %v2285_v2 = vpop.f32.mrf.mxu1 }
 0x1f4   : > { %v2451_v10 = vadd.f32 %v2450_v41, %v2436_v45  ;;  %v2286_v34 = vadd.f32 %v2285_v2, %v2236_v1  ;;  %v1759_v2 = vadd.f32 %v4416_v7, %v4441_v0 }
 0x1f5   : > { %v2312_v20 = vadd.f32 %v2279_v39, %v2038_v37 }
 0x1f7   : > { %v2332_v40 = vadd.f32 %v4495_v12, %v2312_v20 }
 0x1f8   : > { %v2006_v62 = vpop.f32.mrf.mxu3 }
 0x1f9   : > { %v2400_v29 = vsel %vm2386_vm11, %v2332_v40, 0.0  ;;  %v2007_v44 = vadd.f32 %v2006_v62, %v1957_v30 }
 0x1fa   : > { %v2415_v60 = vadd.f32 %v2414_v8, %v2400_v29  ;;  %v2437_v3 = vmul.f32 %v2400_v29, %v2400_v29  ;;  %v2239_v33 = vpop.f32.mrf.mxu0 }
 0x1fb   : > { %v2039_v58 = vadd.f32 %v2007_v44, %v1749_v9  ;;  %v1960_v17 = vpop.f32.mrf.mxu2  ;;  %v2288_v28 = vpop.f32.mrf.mxu1  ;;  %v1757_v9 = vadd.f32 %v4406_v42, %v4434_v15 }
 0x1fc   : > { %v2452_v53 = vadd.f32 %v2451_v10, %v2437_v3 }
 0x1fd   : > { %v2313_v36 = vadd.f32 %v2281_v59, %v2039_v58 }
 0x1ff   : > { %v2333_v21 = vadd.f32 %v4495_v12, %v2313_v36 }
 0x200   : > { %v2009_v26 = vpop.f32.mrf.mxu3 }
 0x201   : > { %v3306_v11 = vpack.c.bf16 %v2333_v21, %v2332_v40  ;;  %v2401_v51 = vsel %vm2386_vm11, %v2333_v21, 0.0  ;;  %v2010_v27 = vadd.f32 %v2009_v26, %v1960_v17 }
 0x202   : > { %v2416_v25 = vadd.f32 %v2415_v60, %v2401_v51  ;;  %v2438_v23 = vmul.f32 %v2401_v51, %v2401_v51  ;;  %v2241_v30 = vpop.f32.mrf.mxu0  ;;  %v2289_v60 = vadd.f32 %v2288_v28, %v2239_v33 }
 0x203   : > { %3366 = vst [vmem:[#allocation2 + $0x18] sm:$0xff] %v3306_v11   ;;  %v2040_v35 = vadd.f32 %v2010_v27, %v1752_v16  ;;  %v1962_v56 = vpop.f32.mrf.mxu2  ;;  %v2290_v40 = vpop.f32.mrf.mxu1 }
 0x204   : > { %v2453_v41 = vadd.f32 %v2452_v53, %v2438_v23  ;;  %v2291_v15 = vadd.f32 %v2290_v40, %v2241_v30 }
 0x205   : > { %v2314_v46 = vadd.f32 %v2284_v48, %v2040_v35  ;;  %v1762_v48 = vadd.f32 %v4423_v38, %v4454_v31  ;;  %v1764_v38 = vadd.f32 %v4436_v14, %v4461_v19  ;;  %v1767_v14 = vadd.f32 %v4443_v4, %v4471_v47 }
 0x206   : > { %v1769_v4 = vadd.f32 %v4456_v24, %v4478_v50  ;;  %v3455_v50 = vmov 0.0  }
 0x207   : > { %v2334_v55 = vadd.f32 %v4495_v12, %v2314_v46  ;;  %2476 = vst [vmem:[#allocation3] sm:$0x3] %v3455_v50 }
 0x208   : > { %v2011_v13 = vpop.f32.mrf.mxu3 }
 0x209   : > { %v2402_v63 = vsel %vm2386_vm11, %v2334_v55, 0.0  ;;  %v2012_v61 = vadd.f32 %v2011_v13, %v1962_v56 }
 0x20a   : > { %v2417_v8 = vadd.f32 %v2416_v25, %v2402_v63  ;;  %v2439_v45 = vmul.f32 %v2402_v63, %v2402_v63  ;;  %v2244_v58 = vpop.f32.mrf.mxu0 }
 0x20b   : > { %v2041_v43 = vadd.f32 %v2012_v61, %v1754_v49  ;;  %v1965_v37 = vpop.f32.mrf.mxu2  ;;  %v2293_v36 = vpop.f32.mrf.mxu1 }
 0x20c   : > { %v2454_v39 = vadd.f32 %v2453_v41, %v2439_v45  ;;  %v2294_v41 = vadd.f32 %v2293_v36, %v2244_v58 }
 0x20d   : > { %v2315_v10 = vadd.f32 %v2286_v34, %v2041_v43 }
 0x20f   : > { %v2335_v20 = vadd.f32 %v4495_v12, %v2315_v10 }
 0x210   : > { %v2014_v62 = vpop.f32.mrf.mxu3 }
 0x211   : > { %v3311_v29 = vpack.c.bf16 %v2335_v20, %v2334_v55  ;;  %v2015_v44 = vadd.f32 %v2014_v62, %v1965_v37 }
 0x212   : > { %v2246_v56 = vpop.f32.mrf.mxu0 }
 0x213   : > { %3367 = vst [vmem:[#allocation2 + $0x10] sm:$0xff] %v3311_v29   ;;  %v2042_v18 = vadd.f32 %v2015_v44, %v1757_v9  ;;  %v1967_v32 = vpop.f32.mrf.mxu2  ;;  %v2295_v46 = vpop.f32.mrf.mxu1 }
 0x214   : > { %v2296_v34 = vadd.f32 %v2295_v46, %v2246_v56  ;;  %v1772_v56 = vadd.f32 %v4463_v52, %v4483_v5 }
 0x215   : > { %v2316_v3 = vadd.f32 %v2289_v60, %v2042_v18 }
 0x217   : > { %v2336_v59 = vadd.f32 %v4495_v12, %v2316_v3 }
 0x218   : > { %v2016_v1 = vpop.f32.mrf.mxu3 }
 0x219   : > { %v2404_v53 = vsel %vm2386_vm11, %v2336_v59, 0.0  ;;  %v2017_v17 = vadd.f32 %v2016_v1, %v1967_v32 }
 0x21a   : > { %v2419_v21 = vadd.f32 %v2417_v8, %v2404_v53  ;;  %v2441_v42 = vmul.f32 %v2404_v53, %v2404_v53  ;;  %v2249_v10 = vpop.f32.mrf.mxu0 }
 0x21b   : > { %v2043_v26 = vadd.f32 %v2017_v17, %v1759_v2  ;;  %v1970_v51 = vpop.f32.mrf.mxu2  ;;  %v2298_v20 = vpop.f32.mrf.mxu1 }
 0x21c   : > { %v2456_v11 = vadd.f32 %v2454_v39, %v2441_v42  ;;  %v2299_v18 = vadd.f32 %v2298_v20, %v2249_v10 }
 0x21d   : > { %v2317_v22 = vadd.f32 %v2291_v15, %v2043_v26 }
 0x21f   : > { %v2337_v16 = vadd.f32 %v4495_v12, %v2317_v22 }
 0x220   : > { %v2019_v27 = vpop.f32.mrf.mxu3 }
 0x221   : > { %v3316_v25 = vpack.c.bf16 %v2337_v16, %v2336_v59  ;;  %v2405_v23 = vsel %vm2386_vm11, %v2337_v16, 0.0  ;;  %v2020_v7 = vadd.f32 %v2019_v27, %v1970_v51 }
 0x222   : > { %v2420_v0 = vadd.f32 %v2419_v21, %v2405_v23  ;;  %v2442_v35 = vmul.f32 %v2405_v23, %v2405_v23  ;;  %v2251_v58 = vpop.f32.mrf.mxu0 }
 0x223   : > { %3368 = vst [vmem:[#allocation2 + $0x8] sm:$0xff] %v3316_v25   ;;  %v2044_v33 = vadd.f32 %v2020_v7, %v1762_v48  ;;  %v1972_v55 = vpop.f32.mrf.mxu2  ;;  %v2300_v2 = vpop.f32.mrf.mxu1 }
 0x224   : > { %v2457_v28 = vadd.f32 %v2456_v11, %v2442_v35  ;;  %v2301_v15 = vadd.f32 %v2300_v2, %v2251_v58 }
 0x225   : > { %v2318_v13 = vadd.f32 %v2294_v41, %v2044_v33 }
 0x227   : > { %v2338_v63 = vadd.f32 %v4495_v12, %v2318_v13 }
 0x228   : > { %v2021_v49 = vpop.f32.mrf.mxu3 }
 0x229   : > { %v2406_v61 = vsel %vm2386_vm11, %v2338_v63, 0.0  ;;  %v2022_v31 = vadd.f32 %v2021_v49, %v1972_v55 }
 0x22a   : > { %v2421_v8 = vadd.f32 %v2420_v0, %v2406_v61  ;;  %v2443_v45 = vmul.f32 %v2406_v61, %v2406_v61  ;;  %v1774_v61 = vadd.f32 %v4473_v6, %v4488_v57 }
 0x22b   : > { %v2045_v43 = vadd.f32 %v2022_v31, %v1764_v38  ;;  %v1975_v37 = vpop.f32.mrf.mxu2  ;;  %v2303_v41 = vpop.f32.mrf.mxu1 }
 0x22c   : > { %v2458_v39 = vadd.f32 %v2457_v28, %v2443_v45 }
 0x22d   : > { %v2319_v30 = vadd.f32 %v2296_v34, %v2045_v43 }
 0x22f   : > { %v2339_v40 = vadd.f32 %v4495_v12, %v2319_v30 }
 0x230   : > { %v2024_v62 = vpop.f32.mrf.mxu3 }
 0x231   : > { %v3321_v29 = vpack.c.bf16 %v2339_v40, %v2338_v63  ;;  %v2407_v9 = vsel %vm2386_vm11, %v2339_v40, 0.0  ;;  %v2025_v19 = vadd.f32 %v2024_v62, %v1975_v37 }
 0x232   : > { %v2422_v44 = vadd.f32 %v2421_v8, %v2407_v9  ;;  %v2444_v60 = vmul.f32 %v2407_v9, %v2407_v9 }
 0x233   : > { %3369 = vst [vmem:[#allocation2 + $0x20] sm:$0xff] %v3321_v29   ;;  %v2046_v32 = vadd.f32 %v2025_v19, %v1767_v14  ;;  %v1977_v59 = vpop.f32.mrf.mxu2  ;;  %v2305_v31 = vpop.f32.mrf.mxu1 }
 0x234   : > { %v2459_v3 = vadd.f32 %v2458_v39, %v2444_v60  ;;  %v2477_v60 = vld [vmem:[#allocation3] sm:$0x3] }
 0x235   : > { %v2320_v1 = vadd.f32 %v2299_v18, %v2046_v32 }
 0x237   : > { %v2340_v53 = vadd.f32 %v4495_v12, %v2320_v1 }
 0x238   : > { %v2026_v17 = vpop.f32.mrf.mxu3 }
 0x239   : > { %v2408_v36 = vsel %vm2386_vm11, %v2340_v53, 0.0  ;;  %v2027_v47 = vadd.f32 %v2026_v17, %v1977_v59 }
 0x23a   : > { %v2423_v21 = vadd.f32 %v2422_v44, %v2408_v36  ;;  %v2445_v42 = vmul.f32 %v2408_v36, %v2408_v36 }
 0x23b   : > { %v2047_v26 = vadd.f32 %v2027_v47, %v1769_v4  ;;  %v1980_v51 = vpop.f32.mrf.mxu2 }
 0x23c   : > { %v2460_v11 = vadd.f32 %v2459_v3, %v2445_v42 }
 0x23d   : > { %v2321_v22 = vadd.f32 %v2301_v15, %v2047_v26 }
 0x23f   : > { %v2341_v16 = vadd.f32 %v4495_v12, %v2321_v22 }
 0x240   : > { %v2029_v7 = vpop.f32.mrf.mxu3 }
 0x241   : > { %v3326_v27 = vpack.c.bf16 %v2341_v16, %v2340_v53  ;;  %v2409_v25 = vsel %vm2386_vm11, %v2341_v16, 0.0  ;;  %v2030_v35 = vadd.f32 %v2029_v7, %v1980_v51 }
 0x242   : > { %v2446_v23 = vmul.f32 %v2409_v25, %v2409_v25  ;;  %v2424_v48 = vadd.f32 %v2423_v21, %v2409_v25 }
 0x243   : > { %3370 = vst [vmem:[#allocation2 + $0x28] sm:$0xff] %v3326_v27   ;;  %v1982_v0 = vpop.f32.mrf.mxu2  ;;  %v2048_v46 = vadd.f32 %v2030_v35, %v1772_v56 }
 0x244   : > { %v2461_v24 = vadd.f32 %v2460_v11, %v2446_v23 }
 0x248   : > { %v2031_v55 = vpop.f32.mrf.mxu3 }
 0x249   : > { %v2032_v63 = vadd.f32 %v2031_v55, %v1982_v0 }
 0x24b   : > { %v2254_v33 = vpop.f32.mrf.mxu2  ;;  %v2049_v43 = vadd.f32 %v2032_v63, %v1774_v61 }
 0x24c   : > { %v2304_v28 = vadd.f32 %v2303_v41, %v2254_v33 }
 0x24e   : > { %v2322_v13 = vadd.f32 %v2304_v28, %v2048_v46 }
 0x250   : > { %v2342_v49 = vadd.f32 %v4495_v12, %v2322_v13 }
 0x252   : > { %v2410_v38 = vsel %vm2386_vm11, %v2342_v49, 0.0 }
 0x253   : > { %v2425_v8 = vadd.f32 %v2424_v48, %v2410_v38  ;;  %v2447_v45 = vmul.f32 %v2410_v38, %v2410_v38  ;;  %v2256_v34 = vpop.f32.mrf.mxu2 }
 0x254   : > { %v2306_v52 = vadd.f32 %v2305_v31, %v2256_v34 }
 0x255   : > { %v2427_v5 = vrot.slane %v2425_v8, 4  ;;  %v2462_v39 = vadd.f32 %v2461_v24, %v2447_v45 }
 0x256   : > { %v2323_v37 = vadd.f32 %v2306_v52, %v2049_v43 }
 0x257   : > { %v2428_v10 = vadd.f32 %v2427_v5, %v2425_v8  ;;  %v2464_v30 = vrot.slane %v2462_v39, 4 }
 0x258   : > { %v2343_v20 = vadd.f32 %v4495_v12, %v2323_v37 }
 0x259   : > { %v2429_v40 = vrot.slane %v2428_v10, 2  ;;  %v2465_v62 = vadd.f32 %v2464_v30, %v2462_v39 }
 0x25a   : > { %v3331_v29 = vpack.c.bf16 %v2343_v20, %v2342_v49 }
 0x25b   : > { %v2430_v6 = vadd.f32 %v2429_v40, %v2428_v10  ;;  %v2466_v57 = vrot.slane %v2465_v62, 2 }
 0x25c   : > { %3371 = vst [vmem:[#allocation2 + $0x38] sm:$0xff] %v3331_v29  }
 0x25d   : > { %v2431_v54 = vrot.slane %v2430_v6, 1  ;;  %v2467_v9 = vadd.f32 %v2466_v57, %v2465_v62 }
 0x25f   : > { %v2468_v14 = vrot.slane %v2467_v9, 1  ;;  %v2432_v19 = vadd.f32 %v2431_v54, %v2430_v6 }
 0x261   : > { %v2469_v44 = vadd.f32 %v2468_v14, %v2467_v9 }
 0x263   : > { %v2471_v18 = vsel %vm2470_vm5, %v2432_v19, %v2469_v44 }
 0x264   : > { %v2478_v32 = vadd.f32 %v2477_v60, %v2471_v18 }
 0x266   : > { %2479 = vst [vmem:[#allocation3] sm:$0x3] %v2478_v32 }
 0x267 PF: > { %p3208_p5 = scmp.ne.s32.totalorder %s3445_s11, 1 }
 0x269   : > { %2483 = sbr.rel (%p3208_p5) target bundleno = 1007 (0x3ef), region = 68 }
 0x26e   : > { %v3456_v12 = vmov 98.0   ;;  %v2484_v53 = vld [vmem:[#allocation3] sm:$0x3]  ;;  %v2510_v23 = vld [vmem:[%s4663_s5] sm:$0x1]  ;;  %v3375_v48 = vld [vmem:[#allocation2 + $0x8] sm:$0xff]  }
 0x26f   : > { %3423 = vrcp.f32 %v3456_v12  ;;  %v3334_v7 = vld [vmem:[#allocation2 + $0x30] sm:$0xff]   ;;  %v3372_v0 = vld [vmem:[#allocation2] sm:$0xff]   ;;  %v3351_v41 = vunpack.c.l.bf16 %v3375_v48  ;;  %v2517_v46 = vld [vmem:[%s4664_s6] sm:$0x1]  ;;  %v3352_v28 = vunpack.c.h.bf16 %v3375_v48 }
 0x270   : > { %v3376_v24 = vld [vmem:[#allocation2 + $0x20] sm:$0xff]   ;;  %v3335_v56 = vunpack.c.l.bf16 %v3334_v7  ;;  %v3339_v33 = vunpack.c.l.bf16 %v3372_v0  ;;  %v3336_v55 = vunpack.c.h.bf16 %v3334_v7  ;;  %v3373_v34 = vld [vmem:[#allocation2 + $0x18] sm:$0xff]   ;;  %v3340_v39 = vunpack.c.h.bf16 %v3372_v0  ;;  %v2643_v60 = vld [vmem:[%s4665_s7 + $0x10] sm:$0xff] }
 0x271   : > { %v3355_v13 = vunpack.c.l.bf16 %v3376_v24  ;;  %v3356_v61 = vunpack.c.h.bf16 %v3376_v24  ;;  %v3343_v10 = vunpack.c.l.bf16 %v3373_v34  ;;  %v2641_v29 = vld [vmem:[%s4665_s7] sm:$0xff] }
 0x275   : > { %v3424_v3 = vpop.eup %3423 }
 0x276   : > { %v2486_v59 = vmul.f32 98.0, %v3424_v3  ;;  %vm2490_vm6 = vweird.f32 %v3424_v3 }
 0x278   : > { %v2487_v1 = vsub.f32 1.0, %v2486_v59 }
 0x27a   : > { %v2488_v58 = vmul.f32 %v3424_v3, %v2487_v1  ;;  %v3377_v1 = vld [vmem:[#allocation2 + $0x28] sm:$0xff]  }
 0x27c   : > { %v2489_v2 = vadd.f32 %v3424_v3, %v2488_v58 }
 0x27e   : > { %v2491_v17 = vsel %vm2490_vm6, %v3424_v3, %v2489_v2 }
 0x27f   : > { %v2492_v36 = vmul.f32 %v2491_v17, %v2484_v53 }
 0x281   : > { %v2493_v4 = vmul.f32 %v2492_v36, %v2492_v36 }
 0x283   : > { %v2495_v47 = vrot.slane %v2493_v4, 7  ;;  %v3344_v4 = vunpack.c.h.bf16 %v3373_v34 }
 0x285   : > { %v2497_v21 = vsub.f32 %v2492_v36, %v2495_v47  ;;  %v3359_v47 = vunpack.c.l.bf16 %v3377_v1 }
 0x287   : > { %v2498_v42 = vmax.f32 %v2497_v21, 0.0 }
 0x289   : > { %v2499_v15 = vadd.f32 1e-05, %v2498_v42  ;;  %v2642_v42 = vld [vmem:[%s4665_s7 + $0x8] sm:$0xff] }
 0x28b   : > { %3425 = vrsqrt.f32 %v2499_v15  ;;  %vm2506_vm7 = vweird.f32 %v2499_v15 }
 0x291   : > { %v3426_v26 = vpop.eup %3425 }
 0x292   : > { %v2501_v11 = vmul.f32 %v3426_v26, %v2499_v15  ;;  %vm2507_vm8 = vweird.f32 %v3426_v26 }
 0x293   : > { %vm2508_vm9 = vmor %vm2506_vm7, %vm2507_vm8 }
 0x294   : > { %v2502_v51 = vmul.f32 %v3426_v26, %v2501_v11 }
 0x296   : > { %v2503_v22 = vmul.f32 0.5, %v2502_v51 }
 0x298   : > { %v2504_v16 = vsub.f32 1.5, %v2503_v22 }
 0x29a   : > { %v2505_v27 = vmul.f32 %v3426_v26, %v2504_v16  ;;  %v3360_v16 = vunpack.c.h.bf16 %v3377_v1 }
 0x29c   : > { %v2509_v25 = vsel %vm2508_vm9, %v3426_v26, %v2505_v27 }
 0x29d   : > { %2512 = vst [vmem:[#allocation1] sm:$0xff] %v2509_v25 }
 0x2a4   : > { %v2514_v50 = vld [vmem:[#allocation1 + $0x1] ss:$9 sm:$0xff] }
 0x2a5   : > { %v2516_v35 = vmul.f32 %v2514_v50, %v2510_v23  ;;  %v3378_v50 = vld [vmem:[#allocation2 + $0x38] sm:$0xff]  }
 0x2a7   : > { %v2518_v63 = vmul.f32 %v2516_v35, %v2492_v36  ;;  %v4581_v49 = vperm.slane %v2516_v35, 0 }
 0x2a9   : > { %v2519_v38 = vsub.f32 %v2517_v46, %v2518_v63  ;;  %v2566_v31 = vmul.f32 %v3351_v41, %v4581_v49  ;;  %v2558_v8 = vmul.f32 %v3335_v56, %v4581_v49  ;;  %v2560_v45 = vmul.f32 %v3339_v33, %v4581_v49  ;;  %v3374_v56 = vld [vmem:[#allocation2 + $0x10] sm:$0xff]  }
 0x2aa   : > { %v2567_v43 = vmul.f32 %v3352_v28, %v4581_v49  ;;  %v2559_v52 = vmul.f32 %v3336_v55, %v4581_v49  ;;  %v2568_v5 = vmul.f32 %v3355_v13, %v4581_v49  ;;  %v2569_v54 = vmul.f32 %v3356_v61, %v4581_v49  ;;  %v2644_v55 = vld [vmem:[%s4665_s7 + $0x18] sm:$0xff] }
 0x2ab   : > { %v4589_v37 = vperm.slane %v2519_v38, 0  ;;  %v2561_v9 = vmul.f32 %v3340_v39, %v4581_v49  ;;  %v2562_v18 = vmul.f32 %v3343_v10, %v4581_v49  ;;  %v2563_v23 = vmul.f32 %v3344_v4, %v4581_v49 }
 0x2ac   : > { %v2570_v24 = vmul.f32 %v3359_v47, %v4581_v49  ;;  %v2571_v41 = vmul.f32 %v3360_v16, %v4581_v49  ;;  %v3363_v46 = vunpack.c.l.bf16 %v3378_v50  ;;  %v3347_v61 = vunpack.c.l.bf16 %v3374_v56 }
 0x2ad   : > { %v2585_v30 = vadd.f32 %v4589_v37, %v2566_v31  ;;  %v2577_v20 = vadd.f32 %v4589_v37, %v2558_v8  ;;  %v2579_v40 = vadd.f32 %v4589_v37, %v2560_v45  ;;  %v2586_v62 = vadd.f32 %v4589_v37, %v2567_v43  ;;  %v2645_v31 = vld [vmem:[%s4665_s7 + $0x20] sm:$0xff] }
 0x2ae   : > { %v2578_v6 = vadd.f32 %v4589_v37, %v2559_v52  ;;  %v2587_v57 = vadd.f32 %v4589_v37, %v2568_v5  ;;  %v2588_v26 = vadd.f32 %v4589_v37, %v2569_v54  ;;  %v2580_v11 = vadd.f32 %v4589_v37, %v2561_v9 }
 0x2af   : > { %vm2601_vm10 = vcmp.ge.f32.partialorder %v2585_v30, 0.0  ;;  %v2617_v14 = vmul.f32 0.2, %v2585_v30  ;;  %vm2593_vm12 = vcmp.ge.f32.partialorder %v2577_v20, 0.0  ;;  %v2609_v19 = vmul.f32 0.2, %v2577_v20 }
 0x2b0   : > { %vm2595_vm13 = vcmp.ge.f32.partialorder %v2579_v40, 0.0  ;;  %v2611_v44 = vmul.f32 0.2, %v2579_v40  ;;  %vm2602_vm14 = vcmp.ge.f32.partialorder %v2586_v62, 0.0  ;;  %v2618_v3 = vmul.f32 0.2, %v2586_v62 }
 0x2b1   : > { %v2633_v32 = vsel %vm2601_vm10, %v2585_v30, %v2617_v14  ;;  %v2625_v12 = vsel %vm2593_vm12, %v2577_v20, %v2609_v19  ;;  %v2610_v59 = vmul.f32 0.2, %v2578_v6  ;;  %vm2594_vm15 = vcmp.ge.f32.partialorder %v2578_v6, 0.0 }
 0x2b2   : > { %v2657_v58 = vmul.f32 %v2641_v29, %v2633_v32  ;;  %v2649_v53 = vmul.f32 %v2641_v29, %v2625_v12  ;;  %v2627_v2 = vsel %vm2595_vm13, %v2579_v40, %v2611_v44  ;;  %vm2603_vm0 = vcmp.ge.f32.partialorder %v2587_v57, 0.0  ;;  %v2646_v29 = vld [vmem:[%s4665_s7 + $0x28] sm:$0xff] }
 0x2b3   : > { %v2651_v17 = vmul.f32 %v2643_v60, %v2627_v2  ;;  %v2619_v36 = vmul.f32 0.2, %v2587_v57  ;;  %v2634_v21 = vsel %vm2602_vm14, %v2586_v62, %v2618_v3  ;;  %v2626_v15 = vsel %vm2594_vm15, %v2578_v6, %v2610_v59 }
 0x2b4   : > { %2681 = vadd.xlane.f32.xlu1 %v2657_v58  ;;  %2665 = vadd.xlane.f32.xlu0 %v2649_v53  ;;  %v2581_v22 = vadd.f32 %v4589_v37, %v2562_v18  ;;  %v2658_v27 = vmul.f32 %v2642_v42, %v2634_v21  ;;  %v2650_v25 = vmul.f32 %v2642_v42, %v2626_v15  ;;  %v2620_v7 = vmul.f32 0.2, %v2588_v26  ;;  %v2647_v58 = vld [vmem:[%s4665_s7 + $0x30] sm:$0xff] }
 0x2b5   : > { %2669 = vadd.xlane.f32.xlu2 %v2651_v17  ;;  %v2635_v51 = vsel %vm2603_vm0, %v2587_v57, %v2619_v36  ;;  %v2612_v0 = vmul.f32 0.2, %v2580_v11  ;;  %vm2604_vm1 = vcmp.ge.f32.partialorder %v2588_v26, 0.0  ;;  %vm2596_vm2 = vcmp.ge.f32.partialorder %v2580_v11, 0.0 }
 0x2b6   : > { %v2659_v48 = vmul.f32 %v2643_v60, %v2635_v51  ;;  %v2613_v35 = vmul.f32 0.2, %v2581_v22  ;;  %vm2597_vm3 = vcmp.ge.f32.partialorder %v2581_v22, 0.0  ;;  %v2582_v33 = vadd.f32 %v4589_v37, %v2563_v23 }
 0x2b7   : > { %v2636_v28 = vsel %vm2604_vm1, %v2588_v26, %v2620_v7  ;;  %v2628_v13 = vsel %vm2596_vm2, %v2580_v11, %v2612_v0  ;;  %v2589_v63 = vadd.f32 %v4589_v37, %v2570_v24  ;;  %v2590_v8 = vadd.f32 %v4589_v37, %v2571_v41 }
 0x2b8   : > { %v2629_v38 = vsel %vm2597_vm3, %v2581_v22, %v2613_v35  ;;  %v3348_v45 = vunpack.c.h.bf16 %v3374_v56  ;;  %v2660_v34 = vmul.f32 %v2644_v55, %v2636_v28  ;;  %v2652_v43 = vmul.f32 %v2644_v55, %v2628_v13 }
 0x2b9   : > { %vm2598_vm4 = vcmp.ge.f32.partialorder %v2582_v33, 0.0  ;;  %v2614_v52 = vmul.f32 0.2, %v2582_v33  ;;  %v2653_v5 = vmul.f32 %v2645_v31, %v2629_v38  ;;  %v2621_v39 = vmul.f32 0.2, %v2589_v63 }
 0x2ba   : > { %v2572_v10 = vmul.f32 %v3363_v46, %v4581_v49  ;;  %v2564_v30 = vmul.f32 %v3347_v61, %v4581_v49  ;;  %vm2605_vm11 = vcmp.ge.f32.partialorder %v2589_v63, 0.0  ;;  %v2622_v20 = vmul.f32 0.2, %v2590_v8 }
 0x2bb   : > { %v2565_v40 = vmul.f32 %v3348_v45, %v4581_v49  ;;  %vm2606_vm5 = vcmp.ge.f32.partialorder %v2590_v8, 0.0  ;;  %v2630_v62 = vsel %vm2598_vm4, %v2582_v33, %v2614_v52  ;;  %v2637_v6 = vsel %vm2605_vm11, %v2589_v63, %v2621_v39 }
 0x2bc   : > { %2683 = vadd.xlane.f32.xlu1 %v2658_v27  ;;  %2667 = vadd.xlane.f32.xlu0 %v2650_v25  ;;  %v2591_v57 = vadd.f32 %v4589_v37, %v2572_v10  ;;  %v2583_v54 = vadd.f32 %v4589_v37, %v2564_v30  ;;  %v3364_v9 = vunpack.c.h.bf16 %v3378_v50  ;;  %v2638_v14 = vsel %vm2606_vm5, %v2590_v8, %v2622_v20 }
 0x2bd   : > { %2685 = vadd.xlane.f32.xlu2 %v2659_v48  ;;  %v2584_v19 = vadd.f32 %v4589_v37, %v2565_v40  ;;  %v2654_v44 = vmul.f32 %v2646_v29, %v2630_v62  ;;  %v2661_v60 = vmul.f32 %v2645_v31, %v2637_v6  ;;  %v2662_v18 = vmul.f32 %v2646_v29, %v2638_v14 }
 0x2be   : > { %v2623_v32 = vmul.f32 0.2, %v2591_v57  ;;  %v2615_v12 = vmul.f32 0.2, %v2583_v54  ;;  %v2573_v3 = vmul.f32 %v3364_v9, %v4581_v49  ;;  %vm2607_vm6 = vcmp.ge.f32.partialorder %v2591_v57, 0.0  ;;  %v2648_v49 = vld [vmem:[%s4665_s7 + $0x38] sm:$0xff] }
 0x2bf   : > { %vm2599_vm7 = vcmp.ge.f32.partialorder %v2583_v54, 0.0  ;;  %v2616_v59 = vmul.f32 0.2, %v2584_v19  ;;  %vm2600_vm8 = vcmp.ge.f32.partialorder %v2584_v19, 0.0  ;;  %v2713_v23 = vlaneseq }
 0x2c0   : > { %v2639_v1 = vsel %vm2607_vm6, %v2591_v57, %v2623_v32  ;;  %v2631_v53 = vsel %vm2599_vm7, %v2583_v54, %v2615_v12  ;;  %v2592_v2 = vadd.f32 %v4589_v37, %v2573_v3  ;;  %vm2718_vm10 = vcmask 130112  }
 0x2c1   : > { %v2632_v17 = vsel %vm2600_vm8, %v2584_v19, %v2616_v59  ;;  %v2663_v36 = vmul.f32 %v2647_v58, %v2639_v1  ;;  %v2655_v4 = vmul.f32 %v2647_v58, %v2631_v53  ;;  %v2714_v7 = vand.u32 127, %v2713_v23 }
 0x2c2   : > { %v2656_v47 = vmul.f32 %v2648_v49, %v2632_v17  ;;  %v2624_v21 = vmul.f32 0.2, %v2592_v2  ;;  %vm2608_vm9 = vcmp.ge.f32.partialorder %v2592_v2, 0.0  ;;  %vm2722_vm12 = vcmask 195712  }
 0x2c3   : > { %v2716_v0 = vadd.s32 4294967288, %v2714_v7  ;;  %v2720_v35 = vadd.s32 4294967280, %v2714_v7  ;;  %v2724_v33 = vadd.s32 4294967272, %v2714_v7  ;;  %v2728_v63 = vadd.s32 4294967264, %v2714_v7 }
 0x2c4   : > { %2687 = vadd.xlane.f32.xlu1 %v2660_v34  ;;  %2671 = vadd.xlane.f32.xlu0 %v2652_v43  ;;  %v2640_v42 = vsel %vm2608_vm9, %v2592_v2, %v2624_v21  ;;  %v2732_v31 = vadd.s32 4294967256, %v2714_v7  ;;  %vm2726_vm13 = vcmask 261312   ;;  %v2736_v45 = vadd.s32 4294967248, %v2714_v7 }
 0x2c5   : > { %2673 = vadd.xlane.f32.xlu2 %v2653_v5  ;;  %v2664_v15 = vmul.f32 %v2648_v49, %v2640_v42  ;;  %vm2730_vm14 = vcmask 326912   ;;  %v2740_v62 = vadd.s32 4294967240, %v2714_v7  ;;  %vm2734_vm15 = vcmask 392512   ;;  %v3422_v49 = vld [vmem:[#allocation4] ss:$0 sm:$0xff] }
 0x2c6   : > { %vm2738_vm0 = vcmask 458112   ;;  %vm2742_vm1 = vcmask 523712   ;;  %vm2759_vm2 = vcmask 1041409   ;;  %vm2762_vm3 = vcmask 517120  }
 0x2c7   : > { %vm2794_vm7 = vcmask 1024  }
 0x2cc   : > { %2675 = vadd.xlane.f32.xlu1 %v2654_v44  ;;  %2689 = vadd.xlane.f32.xlu0 %v2661_v60 }
 0x2cd   : > { %2691 = vadd.xlane.f32.xlu2 %v2662_v18 }
 0x2d4   : > { %2693 = vadd.xlane.f32.xlu1 %v2663_v36  ;;  %2677 = vadd.xlane.f32.xlu0 %v2655_v4 }
 0x2d5   : > { %2679 = vadd.xlane.f32.xlu2 %v2656_v47 }
 0x2dc   : > { %2695 = vadd.xlane.f32.xlu0 %v2664_v15 }
 0x327   : > { %v2682_v26 = vpop.xlane.xlu1 %2681  ;;  %v2666_v11 = vpop.xlane.xlu0 %2665 }
 0x328   : > { %v2670_v51 = vpop.xlane.xlu2 %2669  ;;  %v2744_v46 = vperm.slane %v2682_v26, %v2714_v7  ;;  %v2715_v28 = vperm.slane %v2666_v11, %v2714_v7 }
 0x329   : > { %v2721_v13 = vperm.slane %v2670_v51, %v2720_v35 }
 0x32f   : > { %v2684_v37 = vpop.xlane.xlu1 %2683  ;;  %v2668_v22 = vpop.xlane.xlu0 %2667 }
 0x330   : > { %v2686_v16 = vpop.xlane.xlu2 %2685  ;;  %v2717_v56 = vperm.slane %v2668_v22, %v2716_v0  ;;  %v2745_v55 = vperm.slane %v2684_v37, %v2716_v0 }
 0x331   : > { %v2747_v8 = vperm.slane %v2686_v16, %v2720_v35 }
 0x332   : > { %v2719_v61 = vsel %vm2718_vm10, %v2717_v56, %v2715_v28  ;;  %v2746_v43 = vsel %vm2718_vm10, %v2745_v55, %v2744_v46 }
 0x333   : > { %v2723_v5 = vsel %vm2722_vm12, %v2721_v13, %v2719_v61  ;;  %v2748_v29 = vsel %vm2722_vm12, %v2747_v8, %v2746_v43 }
 0x337   : > { %v2688_v27 = vpop.xlane.xlu1 %2687  ;;  %v2672_v25 = vpop.xlane.xlu0 %2671 }
 0x338   : > { %v2674_v48 = vpop.xlane.xlu2 %2673  ;;  %v2725_v38 = vperm.slane %v2672_v25, %v2724_v33  ;;  %v2749_v52 = vperm.slane %v2688_v27, %v2724_v33 }
 0x339   : > { %v2729_v39 = vperm.slane %v2674_v48, %v2728_v63 }
 0x33a   : > { %v2727_v30 = vsel %vm2726_vm13, %v2725_v38, %v2723_v5  ;;  %v2750_v54 = vsel %vm2726_vm13, %v2749_v52, %v2748_v29 }
 0x33b   : > { %v2731_v14 = vsel %vm2730_vm14, %v2729_v39, %v2727_v30 }
 0x33f   : > { %v2690_v24 = vpop.xlane.xlu0 %2689  ;;  %v2676_v50 = vpop.xlane.xlu1 %2675 }
 0x340   : > { %v2692_v41 = vpop.xlane.xlu2 %2691  ;;  %v2751_v10 = vperm.slane %v2690_v24, %v2728_v63  ;;  %v2733_v20 = vperm.slane %v2676_v50, %v2732_v31 }
 0x341   : > { %v2753_v9 = vperm.slane %v2692_v41, %v2732_v31 }
 0x342   : > { %v2752_v19 = vsel %vm2730_vm14, %v2751_v10, %v2750_v54  ;;  %v2735_v60 = vsel %vm2734_vm15, %v2733_v20, %v2731_v14 }
 0x343   : > { %v2754_v3 = vsel %vm2734_vm15, %v2753_v9, %v2752_v19 }
 0x347   : > { %v2678_v34 = vpop.xlane.xlu0 %2677  ;;  %v2694_v40 = vpop.xlane.xlu1 %2693 }
 0x348   : > { %v2737_v6 = vperm.slane %v2678_v34, %v2736_v45  ;;  %v2680_v57 = vpop.xlane.xlu2 %2679  ;;  %v2755_v44 = vperm.slane %v2694_v40, %v2736_v45 }
 0x349   : > { %v2741_v18 = vperm.slane %v2680_v57, %v2740_v62 }
 0x34a   : > { %v2739_v32 = vsel %vm2738_vm0, %v2737_v6, %v2735_v60  ;;  %v2756_v1 = vsel %vm2738_vm0, %v2755_v44, %v2754_v3 }
 0x34b   : > { %v2743_v58 = vsel %vm2742_vm1, %v2741_v18, %v2739_v32 }
 0x34f   : > { %v2696_v12 = vpop.xlane.xlu0 %2695 }
 0x350   : > { %v2757_v59 = vperm.slane %v2696_v12, %v2740_v62 }
 0x352   : > { %v2758_v53 = vsel %vm2742_vm1, %v2757_v59, %v2756_v1 }
 0x353   : > { %v2760_v2 = vsel %vm2759_vm2, %v2758_v53, %v2743_v58 }
 0x354   : > { %v2763_v17 = vsel %vm2762_vm3, %v2760_v2, 0.0 }
 0x355   : > { %2764 = vadd.xlane.f32.xlu1 %v2763_v17 }
 0x3c8   : > { %v2765_v36 = vpop.xlane.xlu1 %2764 }
 0x3c9   : > { %v2770_v4 = vadd.f32 %v3422_v49, %v2765_v36 }
 0x3cb   : > { %v2771_v47 = vand.u32 2147483647, %v2770_v4  ;;  %vm2791_vm8 = vcmp.ge.f32.partialorder %v2770_v4, 0.0 }
 0x3cd   : > { %v2772_v21 = vsub.f32 0.0, %v2771_v47 }
 0x3cf   : > { %v2773_v42 = vmul.f32 1.442695, %v2772_v21 }
 0x3d1   : > { %3427 = vpow2.f32 %v2773_v42 }
 0x3d7   : > { %v3428_v15 = vpop.eup %3427 }
 0x3d8   : > { %v2775_v26 = vadd.f32 1.0, %v3428_v15 }
 0x3da   : > { %3429 = vrcp.f32 %v2775_v26  ;;  %v2787_v22 = vand.u32 2147483648, %v2775_v26  ;;  %v2785_v27 = vand.u32 2147483647, %v2775_v26  ;;  %vm2781_vm11 = vweird.f32 %v2775_v26 }
 0x3dc   : > { %v2788_v23 = vor.u32 1.1754944e-38, %v2787_v22  ;;  %vm2786_vm6 = vcmp.eq.f32.partialorder %v2785_v27, 8.507059e+37 }
 0x3e0   : > { %v3430_v11 = vpop.eup %3429 }
 0x3e1   : > { %v2777_v51 = vmul.f32 %v3430_v11, %v2775_v26  ;;  %vm2782_vm4 = vweird.f32 %v3430_v11 }
 0x3e2   : > { %vm2783_vm5 = vmor %vm2781_vm11, %vm2782_vm4 }
 0x3e3   : > { %v2778_v37 = vsub.f32 1.0, %v2777_v51 }
 0x3e5   : > { %v2779_v16 = vmul.f32 %v3430_v11, %v2778_v37 }
 0x3e7   : > { %v2780_v25 = vadd.f32 %v3430_v11, %v2779_v16 }
 0x3e9   : > { %v2784_v48 = vsel %vm2783_vm5, %v3430_v11, %v2780_v25 }
 0x3ea   : > { %v2789_v7 = vsel %vm2786_vm6, %v2788_v23, %v2784_v48 }
 0x3eb   : > { %v2792_v0 = vsub.f32 1.0, %v2789_v7 }
 0x3ed   : > { %v2793_v24 = vsel %vm2791_vm8, %v2789_v7, %v2792_v0 }
 0x3ee   : > { %2795 = vst.msk [vmem:[%s4667_s9] sm:$0x3] %vm2794_vm7, %v2793_v24 }
 0x3ef PF: > { %s21_s13 = sadd.s32 1, %s3453_s13   ;;  %s4791_s11 = smov %s3449_s12 }
 0x3f0   : > { %p18_p6 = scmp.ge.s32.totalorder %s21_s13, 4   ;;  %s4792_s12 = smov %s4794_s8 }
 0x3f2   :  { %20 = sbr.rel (!%p18_p6) target bundleno = 3 (0x3), region = 101 }

</bundles_post_ra>
